<compile_context>
chip_gen: v7x
topology: tpu7x:2x2x1
jax: 0.10.0
libtpu: 0.0.40
codegen_flags: <defaults>
</compile_context>

<pallas_src>
import numpy as np
import jax
import jax.numpy as jnp
from jax.experimental import pallas as pl
from jax.experimental.pallas import tpu as pltpu

# ----------------------------- configuration -------------------------------
ESM_DIM = 128            # synthetic stand-in for ESM3_EMBEDDING_SIZE (=1536)
HID = 2 * ESM_DIM        # hidden = 2 * embedding size, as in the module
TIME_DISC = 0.5
N_MODELS = int(1.0 / TIME_DISC) + 1      # = 3 time-binned MLPs

LEVELS_DICT = {
    "level_1": {0: "1.-.-.-", 1: "2.-.-.-"},
    "level_2": {0: "1.1.-.-", 1: "1.2.-.-", 2: "2.1.-.-"},
    "level_3": {0: "1.1.1.-", 1: "1.2.1.-", 2: "2.1.1.-", 3: "2.1.2.-"},
    "level_4": {0: "1.1.1.1", 1: "1.1.1.2", 2: "1.2.1.1",
                3: "2.1.1.1", 4: "2.1.2.1", 5: "2.1.2.3"},
}
LABEL_MASK = [0, 2, 3, 5]                # classifier predicts this EC subset
OUTPUT_DIM = len(LABEL_MASK)
L4 = len(LEVELS_DICT["level_4"])
L3 = len(LEVELS_DICT["level_3"])
L2 = len(LEVELS_DICT["level_2"])
L1 = len(LEVELS_DICT["level_1"])
OUT_COLS = L1 + L2 + L3 + L4             # 15 useful output columns
OUT_PAD = 128                            # lane-dense output slab width

# batch-tile rows: 128 works on every generation (v5e MXU row depth); use
# 256-512 on v6e/v7x at production batch sizes.
TB = 128


def create_hierarchy_matrix(lower_level, higher_level, levels_dict):
    lower = levels_dict[f"level_{lower_level}"]
    higher = levels_dict[f"level_{higher_level}"]
    m = np.zeros((len(lower), len(higher)), dtype=np.float32)
    for hi, hlab in higher.items():
        prefix = hlab.split("-")[0]
        for li, llab in lower.items():
            if llab.startswith(prefix):
                m[li, hi] = 1.0
    return m


# ------------------------------ parameters ---------------------------------
def init_params(key):
    ks = jax.random.split(key, 6)
    scale = 0.02
    p = {
        "w1": scale * jax.random.normal(ks[0], (N_MODELS, ESM_DIM, HID), jnp.float32),
        "b1": scale * jax.random.normal(ks[1], (N_MODELS, 1, HID), jnp.float32),
        "w2": scale * jax.random.normal(ks[2], (N_MODELS, HID, HID), jnp.float32),
        "b2": scale * jax.random.normal(ks[3], (N_MODELS, 1, HID), jnp.float32),
        "w3": scale * jax.random.normal(ks[4], (N_MODELS, HID, OUTPUT_DIM), jnp.float32),
        "b3": scale * jax.random.normal(ks[5], (N_MODELS, 1, OUTPUT_DIM), jnp.float32),
    }
    # output_to_ec: fixed one-hot scatter weights + -1e6 bias on unlabeled ECs
    output_to_ec = np.zeros((L4, OUTPUT_DIM), dtype=np.float32)
    for i_out, i_ec in enumerate(LABEL_MASK):
        output_to_ec[i_ec, i_out] = 1.0
    non_label_mask = np.ones((L4,), dtype=np.float32)
    non_label_mask[LABEL_MASK] = 0.0
    non_label_mask *= -1e6
    p["wec_t"] = jnp.asarray(output_to_ec.T)          # (OUTPUT_DIM, L4)  (ref path)
    p["bec"] = jnp.asarray(non_label_mask)[None, :]   # (1, L4)           (ref path)

    # hierarchy aggregation buffers (kept separately for the reference path)
    m43 = create_hierarchy_matrix(4, 3, LEVELS_DICT)  # (L4, L3)
    m32 = create_hierarchy_matrix(3, 2, LEVELS_DICT)  # (L3, L2)
    m21 = create_hierarchy_matrix(2, 1, LEVELS_DICT)  # (L2, L1)
    p["m43"] = jnp.asarray(m43)
    p["m32"] = jnp.asarray(m32)
    p["m21"] = jnp.asarray(m21)

    # lane-dense aggregation matrix: exp(ec) @ magg = [l1 | l2 | l3 | l4]
    m42 = m43 @ m32
    m41 = m42 @ m21
    magg = np.zeros((L4, OUT_PAD), dtype=np.float32)
    magg[:, 0:L1] = m41
    magg[:, L1:L1 + L2] = m42
    magg[:, L1 + L2:L1 + L2 + L3] = m43
    magg[:, L1 + L2 + L3:OUT_COLS] = np.eye(L4, dtype=np.float32)
    # precompose with output_to_ec: since wec is a one-hot scatter and the
    # -1e6 bias underflows to exp() == 0 in f32, softmax_probs @ maggc is
    # numerically identical to exp(output_to_ec(log_softmax)) @ magg.
    maggc = output_to_ec.T @ magg                     # (OUTPUT_DIM, OUT_PAD)
    p["maggc"] = jnp.asarray(maggc)
    return p


# ------------------------------- kernel ------------------------------------
def _gelu_exact(x):
    # PyTorch nn.GELU() default (erf-based, exact); kept in f32.
    return 0.5 * x * (1.0 + jax.lax.erf(x * np.float32(1.0 / np.sqrt(2.0))))


def classifier_kernel(tile_model_ref,   # scalar prefetch (SMEM): per-tile model id
                      n_used_ref,       # scalar prefetch (SMEM): number of real tiles
                      x_ref, w1_ref, b1_ref, w2_ref, b2_ref, w3_ref, b3_ref,
                      maggc_ref, out_ref):
    del tile_model_ref  # consumed by the BlockSpec index_maps only
    i = pl.program_id(0)

    # Trailing all-padding tiles: skip compute entirely (their weight block
    # index equals the last used tile's, so they never trigger a DMA either).
    @pl.when(i < n_used_ref[0])
    def _():
        x = x_ref[...]                                              # (TB, ESM_DIM) bf16

        # 3-layer MLP of the single model owning this batch tile (bf16 MXU,
        # f32 accumulation).  At real ESM3 dims, chunk GELU+matmul along HID
        # here if the EUP binds on v6e.
        h = jnp.dot(x, w1_ref[0], preferred_element_type=jnp.float32) + b1_ref[0]
        h = _gelu_exact(h).astype(jnp.bfloat16)
        h = jnp.dot(h, w2_ref[0], preferred_element_type=jnp.float32) + b2_ref[0]
        h = _gelu_exact(h).astype(jnp.bfloat16)
        preds = jnp.dot(h, w3_ref[0], preferred_element_type=jnp.float32) + b3_ref[0]

        # Softmax probabilities (== exp(LogSoftmax)), f32, reusing the
        # intermediates for the fused output_to_ec + ECAggregate tail.
        m = jnp.max(preds, axis=1, keepdims=True)
        e = jnp.exp(preds - m)                                      # (TB, OUTPUT_DIM)
        s = jnp.sum(e, axis=1, keepdims=True)
        probs = e * pl.reciprocal(s)                                # exact reciprocal

        # probs @ maggc == exp(output_to_ec(logits)) @ [m41|m42|m43|I]
        # -> one lane-dense (TB, 128) slab: [l1 | l2 | l3 | l4 | pad].
        agg = jnp.dot(probs, maggc_ref[...], preferred_element_type=jnp.float32)
        out_ref[...] = jnp.log(agg + np.float32(1e-10))


# ------------------------------- wrapper ------------------------------------
def classifier_forward_embedded(esm_embed_BH, t_B, params):
    """Equivalent of Classifier.forward_embedded(esm_embed_BH, t)."""
    B = esm_embed_BH.shape[0]
    t = t_B.reshape(B).astype(jnp.float32)

    # Faithful to the module's nested inversions: the effective bin time is
    # (1 - t_original); truncation matches torch .int().
    bins = ((1.0 - t) / TIME_DISC).astype(jnp.int32)
    # Out-of-range t is clamped to the nearest bin (PyTorch would leave zero
    # logits for such rows); behaviour for in-range t is identical.
    bins = jnp.clip(bins, 0, N_MODELS - 1)

    # ---- group rows by time bin (MoE grouped-matmul layout), O(B log B) ----
    perm = jnp.argsort(bins)                                   # bin-sorted row order
    sorted_bins = bins[perm]
    counts = jnp.bincount(bins, length=N_MODELS).astype(jnp.int32)
    tiles_per_group = (counts + TB - 1) // TB
    n_used_tiles = jnp.sum(tiles_per_group).astype(jnp.int32)
    padded_counts = tiles_per_group * TB
    group_row_off = (jnp.cumsum(padded_counts) - padded_counts).astype(jnp.int32)
    group_start = (jnp.cumsum(counts) - counts).astype(jnp.int32)
    rank_sorted = jnp.arange(B, dtype=jnp.int32) - group_start[sorted_bins]
    pos_sorted = group_row_off[sorted_bins] + rank_sorted      # padded slot per sorted row

    n_tiles = B // TB + N_MODELS       # static bound on sum(ceil(count_g/TB))
    r_pad = n_tiles * TB

    # Gather rows straight into a bf16, bin-sorted, tile-padded buffer.
    # Unused pad slots point at row 0 (their outputs are never read).
    src_index = jnp.zeros((r_pad,), jnp.int32).at[pos_sorted].set(perm.astype(jnp.int32))
    x_sorted = jnp.take(esm_embed_BH.astype(jnp.bfloat16), src_index, axis=0)

    # Per-tile model id (non-decreasing).  Zero-row models get zero tiles and
    # are never DMA'd; trailing all-padding tiles reuse the last USED group's
    # model id so they never force an extra weight fetch.
    cum_tiles = jnp.cumsum(tiles_per_group)
    tile_ids = jnp.arange(n_tiles, dtype=jnp.int32)
    tile_model = jnp.sum(tile_ids[:, None] >= cum_tiles[None, :], axis=1).astype(jnp.int32)
    last_used_model = jnp.max(
        jnp.where(counts > 0, jnp.arange(N_MODELS, dtype=jnp.int32), 0)).astype(jnp.int32)
    tile_model = jnp.where(tile_ids < n_used_tiles, tile_model, last_used_model)
    tile_model = tile_model.astype(jnp.int32)
    n_used_arr = n_used_tiles.reshape((1,)).astype(jnp.int32)

    # bf16 weights for the MXU; f32 biases.
    w1 = params["w1"].astype(jnp.bfloat16)
    w2 = params["w2"].astype(jnp.bfloat16)
    w3 = params["w3"].astype(jnp.bfloat16)

    grid_spec = pltpu.PrefetchScalarGridSpec(
        num_scalar_prefetch=2,                      # tile_model, n_used -> SMEM
        grid=(n_tiles,),
        in_specs=[
            pl.BlockSpec((TB, ESM_DIM), lambda i, tm, nu: (i, 0)),                # x
            # At real ESM3 dims on v7x, use pipeline_mode=pl.Buffered(1) on
            # w1/w2 (or a trailing K grid axis + f32 scratch accumulator).
            pl.BlockSpec((1, ESM_DIM, HID), lambda i, tm, nu: (tm[i], 0, 0)),     # w1
            pl.BlockSpec((1, 1, HID), lambda i, tm, nu: (tm[i], 0, 0)),           # b1
            pl.BlockSpec((1, HID, HID), lambda i, tm, nu: (tm[i], 0, 0)),         # w2
            pl.BlockSpec((1, 1, HID), lambda i, tm, nu: (tm[i], 0, 0)),           # b2
            pl.BlockSpec((1, HID, OUTPUT_DIM), lambda i, tm, nu: (tm[i], 0, 0)),  # w3
            pl.BlockSpec((1, 1, OUTPUT_DIM), lambda i, tm, nu: (tm[i], 0, 0)),    # b3
            pl.BlockSpec((OUTPUT_DIM, OUT_PAD), lambda i, tm, nu: (0, 0)),        # maggc
        ],
        out_specs=pl.BlockSpec((TB, OUT_PAD), lambda i, tm, nu: (i, 0)),
    )

    out_padded = pl.pallas_call(
        classifier_kernel,
        out_shape=jax.ShapeDtypeStruct((r_pad, OUT_PAD), jnp.float32),
        grid_spec=grid_spec,
        compiler_params=pltpu.CompilerParams(
            # batch-tile axis is independent -> megacore-shardable
            dimension_semantics=("parallel",),
            # safe on every generation at these sizes; at real ESM3 dims raise
            # toward ~96 MiB on v5e/v6e and single-buffer / K-tile on v7x.
            vmem_limit_bytes=32 * 1024 * 1024),
    )(tile_model, n_used_arr, x_sorted, w1, params["b1"], w2, params["b2"],
      w3, params["b3"], params["maggc"])

    # Back to the original row order (padded slot per original row), then
    # slice the lane-dense slab into the four hierarchy levels.  Columns
    # OUT_COLS..127 are log(1e-10) filler and must not be consumed.
    pos_orig = jnp.zeros((B,), jnp.int32).at[perm].set(pos_sorted)
    out_rows = out_padded[pos_orig]
    o1 = out_rows[:, 0:L1]
    o2 = out_rows[:, L1:L1 + L2]
    o3 = out_rows[:, L1 + L2:L1 + L2 + L3]
    o4 = out_rows[:, L1 + L2 + L3:OUT_COLS]
    return o1, o2, o3, o4


# --------------------------- pure-JAX reference ------------------------------
def reference_forward_embedded(x, t, p):
    # Mirrors the module; applies the same bf16-weight / f32-accumulate casts
    # as the kernel so the comparison isolates the Pallas path.
    bins = jnp.clip(((1.0 - t.reshape(-1, 1)) / TIME_DISC).astype(jnp.int32),
                    0, N_MODELS - 1)
    xb = x.astype(jnp.bfloat16)
    preds = jnp.zeros((x.shape[0], OUTPUT_DIM), jnp.float32)
    for i in range(N_MODELS):
        h = _gelu_exact(jnp.dot(xb, p["w1"][i].astype(jnp.bfloat16),
                                preferred_element_type=jnp.float32) + p["b1"][i])
        h = _gelu_exact(jnp.dot(h.astype(jnp.bfloat16), p["w2"][i].astype(jnp.bfloat16),
                                preferred_element_type=jnp.float32) + p["b2"][i])
        pr = jnp.dot(h.astype(jnp.bfloat16), p["w3"][i].astype(jnp.bfloat16),
                     preferred_element_type=jnp.float32) + p["b3"][i]
        preds = jnp.where(bins == i, pr, preds)
    m = jnp.max(preds, axis=1, keepdims=True)
    logits = preds - (m + jnp.log(jnp.sum(jnp.exp(preds - m), axis=1, keepdims=True)))
    ec = logits @ p["wec_t"] + p["bec"]
    l4 = jnp.exp(ec)
    l3 = l4 @ p["m43"]
    l2 = l3 @ p["m32"]
    l1 = l2 @ p["m21"]
    return tuple(jnp.log(v + 1e-10) for v in (l1, l2, l3, l4))


# --------------------------------- main --------------------------------------
if __name__ == "__main__":
    key = jax.random.PRNGKey(0)
    k_par, k_x = jax.random.split(key)
    params = init_params(k_par)

    B = 96
    x = jax.random.normal(k_x, (B, ESM_DIM), jnp.float32)
    # t pattern covering all three time bins (bin = int((1 - t) / 0.5))
    t_vals = jnp.array([0.0, 0.1, 0.3, 0.5, 0.6, 0.75, 0.9, 1.0], jnp.float32)
    t = jnp.tile(t_vals, B // t_vals.shape[0])

    outs = classifier_forward_embedded(x, t, params)
    outs = jax.block_until_ready(outs)

    refs = reference_forward_embedded(x, t, params)
    expected_shapes = [(B, L1), (B, L2), (B, L3), (B, L4)]
    for o, r, es in zip(outs, refs, expected_shapes):
        assert o.shape == es and o.dtype == jnp.float32
        np.testing.assert_allclose(np.asarray(o), np.asarray(r),
                                   rtol=5e-3, atol=5e-3)
    print("KERNEL_OK")
</pallas_src>

<mosaic_0001>
module attributes {stable_mosaic.version = 11 : i64} {
  func.func @classifier_kernel(%arg0: i32, %arg1: memref<3xi32, #tpu.memory_space<smem>>, %arg2: memref<1xi32, #tpu.memory_space<smem>>, %arg3: memref<128x128xbf16, #tpu.memory_space<vmem>>, %arg4: memref<1x128x256xbf16, #tpu.memory_space<vmem>>, %arg5: memref<1x1x256xf32, #tpu.memory_space<vmem>>, %arg6: memref<1x256x256xbf16, #tpu.memory_space<vmem>>, %arg7: memref<1x1x256xf32, #tpu.memory_space<vmem>>, %arg8: memref<1x256x4xbf16, #tpu.memory_space<vmem>>, %arg9: memref<1x1x4xf32, #tpu.memory_space<vmem>>, %arg10: memref<4x128xf32, #tpu.memory_space<vmem>>, %arg11: memref<128x128xf32, #tpu.memory_space<vmem>>) attributes {dimension_semantics = [#tpu.dimension_semantics<parallel>], iteration_bounds = array<i64: 3>, scalar_prefetch = 2 : i64, scratch_operands = 0 : i64, tpu.core_type = #tpu.core_type<tc>, window_params = [{transform_indices = @transform_0, window_bounds = array<i64: 128, 128>}, {transform_indices = @transform_1, window_bounds = array<i64: 1, 128, 256>}, {transform_indices = @transform_2, window_bounds = array<i64: 1, 1, 256>}, {transform_indices = @transform_3, window_bounds = array<i64: 1, 256, 256>}, {transform_indices = @transform_4, window_bounds = array<i64: 1, 1, 256>}, {transform_indices = @transform_5, window_bounds = array<i64: 1, 256, 4>}, {transform_indices = @transform_6, window_bounds = array<i64: 1, 1, 4>}, {pipeline_mode = #tpu.pipeline_mode<synchronous>, transform_indices = @transform_7, window_bounds = array<i64: 4, 128>}, {transform_indices = @transform_8, window_bounds = array<i64: 128, 128>}]} {
    %c0 = arith.constant 0 : index
    %0 = memref.load %arg2[%c0] : memref<1xi32, #tpu.memory_space<smem>>
    %1 = arith.cmpi slt, %arg0, %0 : i32
    %2 = arith.extui %1 : i1 to i32
    %c0_i32 = arith.constant 0 : i32
    %3 = arith.cmpi ne, %2, %c0_i32 : i32
    scf.if %3 {
      %c0_0 = arith.constant 0 : index
      %c0_1 = arith.constant 0 : index
      %4 = vector.load %arg3[%c0_0, %c0_1] : memref<128x128xbf16, #tpu.memory_space<vmem>>, vector<128x128xbf16>
      %c0_2 = arith.constant 0 : index
      %c0_3 = arith.constant 0 : index
      %c0_4 = arith.constant 0 : index
      %5 = vector.load %arg4[%c0_2, %c0_3, %c0_4] : memref<1x128x256xbf16, #tpu.memory_space<vmem>>, vector<1x128x256xbf16>
      %6 = vector.shape_cast %5 : vector<1x128x256xbf16> to vector<128x256xbf16>
      %cst = arith.constant dense<0.000000e+00> : vector<128x256xf32>
      %7 = tpu.matmul %4, %6, %cst {dimension_numbers = #tpu.dot_dimension_numbers<[1], [0], [0], [1], [0, 0, 1, 1], [], []>} : vector<128x128xbf16>, vector<128x256xbf16>, vector<128x256xf32> -> vector<128x256xf32>
      %c0_5 = arith.constant 0 : index
      %c0_6 = arith.constant 0 : index
      %c0_7 = arith.constant 0 : index
      %8 = vector.load %arg5[%c0_5, %c0_6, %c0_7] : memref<1x1x256xf32, #tpu.memory_space<vmem>>, vector<1x1x256xf32>
      %9 = vector.shape_cast %8 : vector<1x1x256xf32> to vector<1x256xf32>
      %10 = vector.broadcast %9 : vector<1x256xf32> to vector<128x256xf32>
      %11 = arith.addf %7, %10 : vector<128x256xf32>
      %cst_8 = arith.constant 5.000000e-01 : f32
      %12 = vector.broadcast %cst_8 : f32 to vector<128x256xf32>
      %13 = arith.mulf %12, %11 : vector<128x256xf32>
      %cst_9 = arith.constant 0.707106769 : f32
      %14 = vector.broadcast %cst_9 : f32 to vector<128x256xf32>
      %15 = arith.mulf %11, %14 : vector<128x256xf32>
      %16 = math.erf %15 : vector<128x256xf32>
      %cst_10 = arith.constant 1.000000e+00 : f32
      %17 = vector.broadcast %cst_10 : f32 to vector<128x256xf32>
      %18 = arith.addf %17, %16 : vector<128x256xf32>
      %19 = arith.mulf %13, %18 : vector<128x256xf32>
      %20 = arith.truncf %19 : vector<128x256xf32> to vector<128x256xbf16>
      %c0_11 = arith.constant 0 : index
      %c0_12 = arith.constant 0 : index
      %c0_13 = arith.constant 0 : index
      %21 = vector.load %arg6[%c0_11, %c0_12, %c0_13] : memref<1x256x256xbf16, #tpu.memory_space<vmem>>, vector<1x256x256xbf16>
      %22 = vector.shape_cast %21 : vector<1x256x256xbf16> to vector<256x256xbf16>
      %cst_14 = arith.constant dense<0.000000e+00> : vector<128x256xf32>
      %23 = tpu.matmul %20, %22, %cst_14 {dimension_numbers = #tpu.dot_dimension_numbers<[1], [0], [0], [1], [0, 0, 1, 1], [], []>} : vector<128x256xbf16>, vector<256x256xbf16>, vector<128x256xf32> -> vector<128x256xf32>
      %c0_15 = arith.constant 0 : index
      %c0_16 = arith.constant 0 : index
      %c0_17 = arith.constant 0 : index
      %24 = vector.load %arg7[%c0_15, %c0_16, %c0_17] : memref<1x1x256xf32, #tpu.memory_space<vmem>>, vector<1x1x256xf32>
      %25 = vector.shape_cast %24 : vector<1x1x256xf32> to vector<1x256xf32>
      %26 = vector.broadcast %25 : vector<1x256xf32> to vector<128x256xf32>
      %27 = arith.addf %23, %26 : vector<128x256xf32>
      %cst_18 = arith.constant 5.000000e-01 : f32
      %28 = vector.broadcast %cst_18 : f32 to vector<128x256xf32>
      %29 = arith.mulf %28, %27 : vector<128x256xf32>
      %cst_19 = arith.constant 0.707106769 : f32
      %30 = vector.broadcast %cst_19 : f32 to vector<128x256xf32>
      %31 = arith.mulf %27, %30 : vector<128x256xf32>
      %32 = math.erf %31 : vector<128x256xf32>
      %cst_20 = arith.constant 1.000000e+00 : f32
      %33 = vector.broadcast %cst_20 : f32 to vector<128x256xf32>
      %34 = arith.addf %33, %32 : vector<128x256xf32>
      %35 = arith.mulf %29, %34 : vector<128x256xf32>
      %36 = arith.truncf %35 : vector<128x256xf32> to vector<128x256xbf16>
      %c0_21 = arith.constant 0 : index
      %c0_22 = arith.constant 0 : index
      %c0_23 = arith.constant 0 : index
      %37 = vector.load %arg8[%c0_21, %c0_22, %c0_23] : memref<1x256x4xbf16, #tpu.memory_space<vmem>>, vector<1x256x4xbf16>
      %38 = vector.shape_cast %37 : vector<1x256x4xbf16> to vector<256x4xbf16>
      %cst_24 = arith.constant dense<0.000000e+00> : vector<128x4xf32>
      %39 = tpu.matmul %36, %38, %cst_24 {dimension_numbers = #tpu.dot_dimension_numbers<[1], [0], [0], [1], [0, 0, 1, 1], [], []>} : vector<128x256xbf16>, vector<256x4xbf16>, vector<128x4xf32> -> vector<128x4xf32>
      %c0_25 = arith.constant 0 : index
      %c0_26 = arith.constant 0 : index
      %c0_27 = arith.constant 0 : index
      %40 = vector.load %arg9[%c0_25, %c0_26, %c0_27] : memref<1x1x4xf32, #tpu.memory_space<vmem>>, vector<1x1x4xf32>
      %41 = vector.shape_cast %40 : vector<1x1x4xf32> to vector<1x4xf32>
      %42 = vector.broadcast %41 : vector<1x4xf32> to vector<128x4xf32>
      %43 = arith.addf %39, %42 : vector<128x4xf32>
      %cst_28 = arith.constant dense<0xFF800000> : vector<128xf32>
      %44 = vector.multi_reduction <maximumf>, %43, %cst_28 [1] : vector<128x4xf32> to vector<128xf32>
      %45 = vector.shape_cast %44 : vector<128xf32> to vector<128x1xf32>
      %46 = vector.broadcast %45 : vector<128x1xf32> to vector<128x4xf32>
      %47 = arith.subf %43, %46 : vector<128x4xf32>
      %48 = math.exp %47 : vector<128x4xf32>
      %cst_29 = arith.constant dense<0.000000e+00> : vector<128xf32>
      %49 = vector.multi_reduction <add>, %48, %cst_29 [1] : vector<128x4xf32> to vector<128xf32>
      %50 = vector.shape_cast %49 : vector<128xf32> to vector<128x1xf32>
      %51 = tpu.reciprocal %50 : vector<128x1xf32> -> vector<128x1xf32>
      %52 = vector.broadcast %51 : vector<128x1xf32> to vector<128x4xf32>
      %53 = arith.mulf %48, %52 : vector<128x4xf32>
      %c0_30 = arith.constant 0 : index
      %c0_31 = arith.constant 0 : index
      %54 = vector.load %arg10[%c0_30, %c0_31] : memref<4x128xf32, #tpu.memory_space<vmem>>, vector<4x128xf32>
      %cst_32 = arith.constant dense<0.000000e+00> : vector<128x128xf32>
      %55 = tpu.matmul %53, %54, %cst_32 {dimension_numbers = #tpu.dot_dimension_numbers<[1], [0], [0], [1], [0, 0, 1, 1], [], []>} : vector<128x4xf32>, vector<4x128xf32>, vector<128x128xf32> -> vector<128x128xf32>
      %cst_33 = arith.constant 1.000000e-10 : f32
      %56 = vector.broadcast %cst_33 : f32 to vector<128x128xf32>
      %57 = arith.addf %55, %56 : vector<128x128xf32>
      %58 = math.log %57 : vector<128x128xf32>
      %c0_34 = arith.constant 0 : index
      %c0_35 = arith.constant 0 : index
      %59 = vector.load %arg11[%c0_34, %c0_35] : memref<128x128xf32, #tpu.memory_space<vmem>>, vector<128x128xf32>
      tpu.vector_store %arg11[%c0_34, %c0_35], %58 {strides = array<i32>} : memref<128x128xf32, #tpu.memory_space<vmem>>, vector<128x128xf32>,
    } else {
    }
    return
  }
  func.func @transform_0(%arg0: i32, %arg1: memref<3xi32, #tpu.memory_space<smem>>, %arg2: memref<1xi32, #tpu.memory_space<smem>>) -> (i32, i32) {
    %c0_i32 = arith.constant 0 : i32
    %c0_i32_0 = arith.constant 0 : i32
    return %arg0, %c0_i32 : i32, i32
  }
  func.func @transform_1(%arg0: i32, %arg1: memref<3xi32, #tpu.memory_space<smem>>, %arg2: memref<1xi32, #tpu.memory_space<smem>>) -> (i32, i32, i32) {
    %0 = arith.index_cast %arg0 : i32 to index
    %1 = memref.load %arg1[%0] : memref<3xi32, #tpu.memory_space<smem>>
    %c0_i32 = arith.constant 0 : i32
    %c0_i32_0 = arith.constant 0 : i32
    %c0_i32_1 = arith.constant 0 : i32
    return %1, %c0_i32, %c0_i32_0 : i32, i32, i32
  }
  func.func @transform_2(%arg0: i32, %arg1: memref<3xi32, #tpu.memory_space<smem>>, %arg2: memref<1xi32, #tpu.memory_space<smem>>) -> (i32, i32, i32) {
    %0 = arith.index_cast %arg0 : i32 to index
    %1 = memref.load %arg1[%0] : memref<3xi32, #tpu.memory_space<smem>>
    %c0_i32 = arith.constant 0 : i32
    %c0_i32_0 = arith.constant 0 : i32
    %c0_i32_1 = arith.constant 0 : i32
    return %1, %c0_i32, %c0_i32_0 : i32, i32, i32
  }
  func.func @transform_3(%arg0: i32, %arg1: memref<3xi32, #tpu.memory_space<smem>>, %arg2: memref<1xi32, #tpu.memory_space<smem>>) -> (i32, i32, i32) {
    %0 = arith.index_cast %arg0 : i32 to index
    %1 = memref.load %arg1[%0] : memref<3xi32, #tpu.memory_space<smem>>
    %c0_i32 = arith.constant 0 : i32
    %c0_i32_0 = arith.constant 0 : i32
    %c0_i32_1 = arith.constant 0 : i32
    return %1, %c0_i32, %c0_i32_0 : i32, i32, i32
  }
  func.func @transform_4(%arg0: i32, %arg1: memref<3xi32, #tpu.memory_space<smem>>, %arg2: memref<1xi32, #tpu.memory_space<smem>>) -> (i32, i32, i32) {
    %0 = arith.index_cast %arg0 : i32 to index
    %1 = memref.load %arg1[%0] : memref<3xi32, #tpu.memory_space<smem>>
    %c0_i32 = arith.constant 0 : i32
    %c0_i32_0 = arith.constant 0 : i32
    %c0_i32_1 = arith.constant 0 : i32
    return %1, %c0_i32, %c0_i32_0 : i32, i32, i32
  }
  func.func @transform_5(%arg0: i32, %arg1: memref<3xi32, #tpu.memory_space<smem>>, %arg2: memref<1xi32, #tpu.memory_space<smem>>) -> (i32, i32, i32) {
    %0 = arith.index_cast %arg0 : i32 to index
    %1 = memref.load %arg1[%0] : memref<3xi32, #tpu.memory_space<smem>>
    %c0_i32 = arith.constant 0 : i32
    %c0_i32_0 = arith.constant 0 : i32
    %c0_i32_1 = arith.constant 0 : i32
    return %1, %c0_i32, %c0_i32_0 : i32, i32, i32
  }
  func.func @transform_6(%arg0: i32, %arg1: memref<3xi32, #tpu.memory_space<smem>>, %arg2: memref<1xi32, #tpu.memory_space<smem>>) -> (i32, i32, i32) {
    %0 = arith.index_cast %arg0 : i32 to index
    %1 = memref.load %arg1[%0] : memref<3xi32, #tpu.memory_space<smem>>
    %c0_i32 = arith.constant 0 : i32
    %c0_i32_0 = arith.constant 0 : i32
    %c0_i32_1 = arith.constant 0 : i32
    return %1, %c0_i32, %c0_i32_0 : i32, i32, i32
  }
  func.func @transform_7(%arg0: i32, %arg1: memref<3xi32, #tpu.memory_space<smem>>, %arg2: memref<1xi32, #tpu.memory_space<smem>>) -> (i32, i32) {
    %c0_i32 = arith.constant 0 : i32
    %c0_i32_0 = arith.constant 0 : i32
    %c0_i32_1 = arith.constant 0 : i32
    return %c0_i32, %c0_i32_0 : i32, i32
  }
  func.func @transform_8(%arg0: i32, %arg1: memref<3xi32, #tpu.memory_space<smem>>, %arg2: memref<1xi32, #tpu.memory_space<smem>>) -> (i32, i32) {
    %c0_i32 = arith.constant 0 : i32
    %c0_i32_0 = arith.constant 0 : i32
    return %arg0, %c0_i32 : i32, i32
  }
}

</mosaic_0001>

<bundles_post_ra>
// kernel: tpu_custom_call.1
= control target key start
LH: loop header
LB: loop body
LE: loop exit
PB: predicated region body
PF: predicated region fallthrough
CT: control target
= control target key end

     0   :  { %s3967_s0 = inlined_call_operand.vmem [shape: s32[3], index: 0, kind: input, shape index: {}]   ;;  %s3968_s1 = inlined_call_operand.<no memory space> [shape: s32[1], index: 1, kind: input, shape index: {}]   ;;  %s3969_s2 = inlined_call_operand.hbm [shape: bf16[384,128], index: 2, kind: input, shape index: {}]   ;;  %s3970_s3 = inlined_call_operand.vmem [shape: bf16[3,128,256], index: 3, kind: input, shape index: {}]   ;;  %s3971_s4 = inlined_call_operand.vmem [shape: f32[3,1,256], index: 4, kind: input, shape index: {}]   ;;  %s3972_s5 = inlined_call_operand.hbm [shape: bf16[3,256,256], index: 5, kind: input, shape index: {}]   ;;  %s3973_s6 = inlined_call_operand.vmem [shape: f32[3,1,256], index: 6, kind: input, shape index: {}]   ;;  %s3974_s7 = inlined_call_operand.vmem [shape: bf16[3,256,4], index: 7, kind: input, shape index: {}]   ;;  %s3975_s8 = inlined_call_operand.vmem [shape: f32[3,1,4], index: 8, kind: input, shape index: {}]   ;;  %s3976_s9 = inlined_call_operand.vmem [shape: f32[4,128], index: 9, kind: input, shape index: {}]   ;;  %s3977_s10 = inlined_call_operand.hbm [shape: f32[384,128], index: 10, kind: output, shape index: {}]  }
   0x1   :  { %3994 = sst [smem:[#allocation27_spill]] %s3969_s2  ;;  %s15_s15 = sshll.u32 %s3967_s0, 4  ;;  %s16_s15 = int_to_ptr.vmem [resolvable:$true] %s15_s15 }
   0x2   :  { %3995 = sst [smem:[#allocation28_spill]] %s3972_s5  ;;  %s2918_s18 = scalar_lea.vmem %s16_s15, 16 }
   0x3   :  { %3996 = sst [smem:[#allocation29_spill]] %s3977_s10  ;;  %p2919_p0 = scmp.ne.s32.totalorder %s16_s15, %s2918_s18 }
   0x4   :  { %19 = sst [smem:[#allocation4]] %s3968_s1  ;;  %p2923_p1 = scmp.lt.s32.totalorder %s16_s15, %s16_s15 }
   0x5   :  { %p2924_p2 = scmp.lt.s32.totalorder %s2918_s18, %s2918_s18 }
   0x7   :  { %p2925_p3 = por %p2924_p2, %p2923_p1 }
   0x9   :  { %p2926_p4 = pnand %p2925_p3, %p2919_p0 }
   0xb   :  { %2929 = shalt.err (!%p2926_p4)  }
   0xc   :  { %s3088_s19 = smov [#allocation3]  }
   0xd   :  { %18 = dma.vmem_to_smem %s16_s15, 16, %s3088_s19, [#allocation2] }
   0xe   :  { %3046 = dma.done.wait [#allocation2], 16 }
   0xf   :  { %3047 = vsyncadd [#allocation2], 4294967280 }
  0x10   :  { %21 = sfence }
  0x11   :  { %22 = vsyncpa [#allocation6], 0 }
  0x12   :  { %24 = vsyncpa [#allocation6 + $0x1], 0 }
  0x13   :  { %25 = vsyncpa [#allocation9], 0 }
  0x14   :  { %27 = vsyncpa [#allocation9 + $0x1], 0 }
  0x15   :  { %28 = vsyncpa [#allocation7], 0 }
  0x16   :  { %30 = vsyncpa [#allocation7 + $0x1], 0  ;;  %s3160_s0 = smov 0   ;;  %s3162_s1 = smov 0  }
  0x17   :  { %s3164_s20 = smov 0   ;;  %s3166_s21 = smov 0  }
  0x18   :  { %s3168_s22 = smov 0   ;;  %s3170_s23 = smov 0  }
  0x19   :  { %s3172_s24 = smov 0  }
  0x1a LB: > { %3997 = sst [smem:[#allocation17_spill]] %s3066_s1  ;;  %s3196_s25 = sadd.s32 4294967295, %s3086_s24   ;;  %s3086_s24 = sphi %s3172_s24, %s4031_s24   ;;  %s3082_s23 = sphi %s3170_s23, %s4037_s23   ;;  %s3078_s22 = sphi %s3168_s22, %s4036_s22   ;;  %s3074_s21 = sphi %s3166_s21, %s4035_s21   ;;  %s3070_s20 = sphi %s3164_s20, %s4034_s20   ;;  %s3066_s1 = sphi %s3162_s1, %s4033_s1   ;;  %s3062_s0 = sphi %s3160_s0, %s4032_s0  }
  0x1b   : > { %3998 = sst [smem:[#allocation18_spill]] %s3070_s20  ;;  %s2284_s26 = sadd.s32 4294967294, %s3086_s24  }
  0x1c   : > { %3999 = sst [smem:[#allocation19_spill]] %s3074_s21  ;;  %s3200_s27 = sadd.s32 1, %s3086_s24  }
  0x1d   : > { %4000 = sst [smem:[#allocation20_spill]] %s3078_s22  ;;  %s43_s28 = sadd.s32 1, %s3082_s23 }
  0x1e   : > { %4001 = sst [smem:[#allocation21_spill]] %s3082_s23  ;;  %s40_s29 = ssub.s32 %s3086_s24, %s3200_s27 }
  0x1f   : > { %4002 = sst [smem:[#allocation22_spill]] %s3086_s24  ;;  %p50_p5 = scmp.ne.s32.totalorder %s3082_s23, %s3078_s22 }
  0x20   : > { %4003 = sst [smem:[#allocation23_spill]] %s3200_s27  ;;  %p41_p6 = scmp.eq.s32.totalorder %s40_s29, 0 }
  0x21   : > { %p3982_p7 = scmp.eq.s32.totalorder %s3086_s24, 0  ;;  %p56_p8 = scmp.ne.s32.totalorder %s3078_s22, %s3074_s21 }
  0x22   : > { %p3983_p9 = scmp.eq.s32.totalorder %s3196_s25, 0  ;;  %s3227_s13 = sld [smem:[#allocation3 + %s3200_s27]] }
  0x23   : > { %s3212_s30 = scalar_select %p41_p6, %s3082_s23, %s43_s28  }
  0x24   : > { %p3216_p10 = por %p3982_p7, %p50_p5  ;;  %p3222_p11 = por %p3983_p9, %p56_p8 }
  0x25   : > { %4004 = sst [smem:[#allocation24_spill]] %s3212_s30  ;;  %p269_p12 = scmp.eq.s32.totalorder %s3196_s25, 2 }
  0x26   : > { %s4006_s12 = scalar_select %p3222_p11, 1, 0 }
  0x27   : > { %p275_p13 = scmp.eq.s32.totalorder %s2284_s26, 2  ;;  %p3230_p0 = por %p269_p12, %p50_p5 }
  0x28   : > { %p3981_p1 = scmp.lt.s32.totalorder %s3086_s24, 3  ;;  %s298_s16 = sand.u32 1, %s3082_s23  }
  0x29   : > { %s4007_s14 = scalar_select %p3230_p0, 1, 0 }
  0x2a   : > { %p3235_p2 = por %p275_p13, %p56_p8  ;;  %s2287_s17 = sshll.u32 %s298_s16, 6 }
  0x2b   : > { %s2399_s18 = sshll.u32 %s3086_s24, 10  ;;  %s4010_s2 = sld [smem:[#allocation27_spill]] }
  0x2c   : > { %s4008_s15 = scalar_select %p3235_p2, 1, 0 }
  0x2d   : > { %s302_s26 = scalar_lea.vmem [#allocation5], %s2287_s17  ;;  %p3252_p3 = pnand %p3981_p1, %p3216_p10 }
  0x2e   : > { %4009 = sst [smem:[#allocation25_spill]] %s4008_s15  ;;  %s309_s30 = sshll.u32 %s302_s26, 4  ;;  %s3246_s30 = int_to_ptr.vmem [resolvable:$true] %s309_s30 }
  0x2f   : > { %s3257_s19 = scalar_lea.sflag [#allocation6], %s298_s16  ;;  %p2932_p6 = pneg %p3252_p3 }
  0x31   : > { %s3244_s29 = scalar_lea.hbm %s4010_s2, %s2399_s18  ;;  %s2935_s28 = scalar_lea.hbm %s4010_s2, 3072 }
  0x32   : > { %s2930_s18 = scalar_lea.hbm %s3244_s29, 1024  ;;  %p2936_p10 = scmp.lt.u32.totalorder %s3244_s29, %s4010_s2 }
  0x33   : > { %p2931_p5 = scmp.ne.s32.totalorder %s3244_s29, %s2930_s18  ;;  %p2937_p13 = scmp.lt.u32.totalorder %s2935_s28, %s2930_s18 }
  0x34   : > { %p2939_p7 = scmp.lt.u32.totalorder %s2930_s18, %s3244_s29 }
  0x35   : > { %p2933_p8 = pnand %p2932_p6, %p2931_p5  ;;  %p2938_p1 = por %p2937_p13, %p2936_p10 }
  0x37   : > { %p2934_p12 = pneg %p2933_p8  ;;  %p2940_p9 = por %p2939_p7, %p2938_p1 }
  0x39   : > { %p2941_p4 = pnand %p2940_p9, %p2934_p12 }
  0x3b   : > { %2944 = shalt.err (!%p2941_p4)
}
  0x3c   : > { %s2945_s16 = scalar_lea.vmem %s3246_s30, 1024  ;;  %s3089_s17 = smov [#allocation5]  }
  0x3d   : > { %p2946_p5 = scmp.ne.s32.totalorder %s3246_s30, %s2945_s16  ;;  %s2950_s11 = sshll.u32 %s3089_s17, 4  ;;  %s2951_s11 = int_to_ptr.vmem [resolvable:$false] %s2950_s11 }
  0x3e   : > { %s2952_s23 = scalar_lea.vmem %s2951_s11, 2048  ;;  %p2953_p0 = scmp.lt.s32.totalorder %s3246_s30, %s2951_s11 }
  0x3f   : > { %p2948_p8 = pnand %p2946_p5, %p2932_p6  ;;  %p2954_p10 = scmp.lt.s32.totalorder %s2952_s23, %s2945_s16 }
  0x41   : > { %p2949_p2 = pneg %p2948_p8  ;;  %p2955_p13 = por %p2954_p10, %p2953_p0 }
  0x43   : > { %p2956_p7 = pnand %p2955_p13, %p2949_p2 }
  0x45   : > { %2959 = shalt.err (!%p2956_p7)
}
  0x46   : > { %s3090_s18 = smov 64   ;;  %s3091_s28 = smov 4  }
  0x47   : > { %2522 = dma.hbm_to_vmem [thread:$0]  (!%p3252_p3), %s3244_s29, 1024, %s3246_s30, %s3257_s19, %s3090_s18, %s3090_s18, %s3091_s28  }
  0x48   : > { %p385_p9 = scmp.lt.s32.totalorder %s3086_s24, 4  ;;  %p4012_p0 = scmp.ge.s32.totalorder %s3086_s24, 1 }
  0x49   : > { %s122_s16 = sld [smem:[#allocation3 + %s3086_s24]]  ;;  %p134_p2 = scmp.ne.s32.totalorder %s3070_s20, %s3066_s1 }
  0x4a   : > { %p3288_p1 = pnand %p4012_p0, %p385_p9  ;;  %p140_p4 = scmp.ne.s32.totalorder %s3066_s1, %s3062_s0 }
  0x4b   : > { %p4014_p6 = scmp.eq.s32.totalorder %s3196_s25, 0  ;;  %s338_s27 = sand.u32 1, %s3070_s20  }
  0x4c   : > { %p4016_p5 = scmp.eq.s32.totalorder %s3086_s24, 0  ;;  %s127_s30 = sadd.s32 1, %s3070_s20 }
  0x4d   : > { %p3299_p12 = por %p140_p4, %p4014_p6  ;;  %s2290_s19 = sshll.u32 %s338_s27, 8 }
  0x4e   : > { %p136_p3 = por %p134_p2, %p4016_p5  ;;  %p4017_p10 = scmp.lt.s32.totalorder %s3086_s24, 3 }
  0x4f   : > { %s4015_s17 = scalar_select %p3299_p12, 1, 0 }
  0x50   : > { %s124_s29 = ssub.s32 %s122_s16, %s3227_s13  ;;  %p3310_p13 = pnand %p4017_p10, %p136_p3 }
  0x51   : > { %p125_p8 = scmp.eq.s32.totalorder %s124_s29, 0  ;;  %p4020_p7 = pmov %p4017_p10 }
  0x52   : > { %s2512_s0 = scalar_select %p136_p3, [#allocation3], [#allocation11] }
  0x53   : > { %s3315_s23 = scalar_select %p125_p8, %s3070_s20, %s127_s30  }
  0x54   : > { %s2513_s18 = scalar_select %p136_p3, %s3086_s24, 0 }
  0x55   : > { %4019 = sst [smem:[#allocation26_spill]] %s3315_s23  ;;  %s4039_s0 = smov (!%p4020_p7, %s2512_s0), [#allocation12] }
  0x56   : > { %p4021_p9 = pmov %p4020_p7  ;;  %s342_s2 = scalar_lea.vmem [#allocation8], %s2290_s19 }
  0x57   : > { %s350_s13 = sshll.u32 %s342_s2, 4  ;;  %s4022_s5 = sld [smem:[#allocation28_spill]]  ;;  %s3322_s13 = int_to_ptr.vmem [resolvable:$true] %s350_s13 }
  0x58   : > { %s4041_s18 = smov (!%p4021_p9, %s2513_s18), 0  ;;  %s3329_s30 = scalar_lea.sflag [#allocation9], %s338_s27 }
  0x59   : > { %s343_s28 = sld [smem:[%s4039_s0 + %s4041_s18]]  ;;  %p2962_p2 = pneg %p3310_p13 }
  0x5d   : > { %s2965_s15 = scalar_lea.hbm %s4022_s5, 12288 }
  0x5f   : > { %s2400_s16 = sshll.u32 %s343_s28, 12 }
  0x60   : > { %s3327_s21 = scalar_lea.hbm %s4022_s5, %s2400_s16 }
  0x61   : > { %s2960_s23 = scalar_lea.hbm %s3327_s21, 4096  ;;  %p2966_p5 = scmp.lt.u32.totalorder %s3327_s21, %s4022_s5 }
  0x62   : > { %p2961_p0 = scmp.ne.s32.totalorder %s3327_s21, %s2960_s23  ;;  %p2967_p3 = scmp.lt.u32.totalorder %s2965_s15, %s2960_s23 }
  0x63   : > { %p2969_p10 = scmp.lt.u32.totalorder %s2960_s23, %s3327_s21 }
  0x64   : > { %p2963_p4 = pnand %p2962_p2, %p2961_p0  ;;  %p2968_p8 = por %p2967_p3, %p2966_p5 }
  0x66   : > { %p2964_p6 = pneg %p2963_p4  ;;  %p2970_p7 = por %p2969_p10, %p2968_p8 }
  0x68   : > { %p2971_p9 = pnand %p2970_p7, %p2964_p6 }
  0x6a   : > { %2974 = shalt.err (!%p2971_p9)
}
  0x6b   : > { %s2975_s27 = scalar_lea.vmem %s3322_s13, 4096  ;;  %s3092_s28 = smov [#allocation8]  }
  0x6c   : > { %p2976_p0 = scmp.ne.s32.totalorder %s3322_s13, %s2975_s27  ;;  %s2980_s16 = sshll.u32 %s3092_s28, 4  ;;  %s2981_s16 = int_to_ptr.vmem [resolvable:$false] %s2980_s16 }
  0x6d   : > { %s2982_s29 = scalar_lea.vmem %s2981_s16, 8192  ;;  %p2983_p11 = scmp.lt.s32.totalorder %s3322_s13, %s2981_s16 }
  0x6e   : > { %p2978_p4 = pnand %p2976_p0, %p2962_p2  ;;  %p2984_p5 = scmp.lt.s32.totalorder %s2982_s29, %s2975_s27 }
  0x70   : > { %p2979_p12 = pneg %p2978_p4  ;;  %p2985_p3 = por %p2984_p5, %p2983_p11 }
  0x72   : > { %p2986_p8 = pnand %p2985_p3, %p2979_p12 }
  0x74   : > { %2989 = shalt.err (!%p2986_p8)
}
  0x75   : > { %s3093_s23 = smov 128   ;;  %s3094_s2 = smov 8  }
  0x76   : > { %2527 = dma.hbm_to_vmem [thread:$0]  (!%p3310_p13), %s3327_s21, 4096, %s3322_s13, %s3329_s30, %s3093_s23, %s3093_s23, %s3094_s2  }
  0x77   : > { %389 = sbr.rel (%p3288_p1) target bundleno = 1500 (0x5dc), region = 52  ;;  %s3360_s19 = sand.u32 (!%p3288_p1), 1, %s3078_s22  }
  0x78   : > { %s2294_s15 = sshll.u32 (!%p3288_p1), %s3360_s19, 6  ;;  %s392_s0 = scalar_lea.sflag (!%p3288_p1), [#allocation6], %s3360_s19 }
  0x79   : > { %s3364_s18 = scalar_lea.vmem (!%p3288_p1), [#allocation5], %s2294_s15  ;;  %p4023_p11 = scmp.ne.s32.totalorder (!%p3288_p1), %s4006_s12, 0 }
  0x7e   : > { %3049 = dma.done.wait (%p4023_p11), %s392_s0, 1024  }
  0x7f   : > { %3051 = vsyncadd (%p4023_p11), %s392_s0, 4294966272  ;;  %s400_s21 = sand.u32 1, %s3066_s1   ;;  %p4024_p1 = scmp.ne.s32.totalorder %s4015_s17, 0 }
  0x80   : > { %s2295_s26 = sshll.u32 %s400_s21, 8  ;;  %s401_s11 = scalar_lea.sflag [#allocation9], %s400_s21 }
  0x81   : > { %s3371_s13 = scalar_lea.vmem [#allocation8], %s2295_s26 }
  0x82   : > { %3053 = dma.done.wait (%p4024_p1), %s401_s11, 4096  }
  0x83   : > { %3055 = vsyncadd (%p4024_p1), %s401_s11, 4294963200  ;;  %s2296_s12 = sshll.u32 %s3360_s19, 7  ;;  %s469_s30 = sld [smem:[#allocation3 + %s3196_s25]] }
  0x84   : > { %s476_s27 = sld [smem:[#allocation3 + %s3196_s25]]  ;;  %s3409_s26 = scalar_lea.vmem [#allocation10], %s2296_s12 }
  0x85   : > { %s483_s28 = sld [smem:[#allocation3 + %s3196_s25]] }
  0x86   : > { %s489_s16 = sld [smem:[#allocation3 + %s3196_s25]] }
  0x87   : > { %s503_s29 = sld [smem:[#allocation4]] }
  0x88   : > { %s496_s23 = sld [smem:[#allocation3 + %s3196_s25]] }
  0x89   : > { %p470_p12 = scmp.lt.s32.totalorder %s469_s30, 2 }
  0x8a   : > { %p477_p13 = scmp.lt.s32.totalorder %s476_s27, 2 }
  0x8b   : > { %p484_p2 = scmp.lt.s32.totalorder %s483_s28, 2  ;;  %s4043_s30 = smov (!%p470_p12, %s469_s30), 2 }
  0x8c   : > { %s4045_s27 = smov (!%p477_p13, %s476_s27), 2  ;;  %s2401_s17 = sshll.u32 %s4043_s30, 7 }
  0x8d   : > { %p490_p6 = scmp.lt.s32.totalorder %s489_s16, 2  ;;  %s3386_s0 = scalar_lea.vmem %s3970_s3, %s2401_s17 }
  0x8e   : > { %s2299_s21 = sshll.u32 %s4045_s27, 1  ;;  %p497_p10 = scmp.lt.s32.totalorder %s496_s23, 2 }
  0x8f   : > { %s3391_s5 = scalar_lea.vmem %s3971_s4, %s2299_s21  ;;  %s4047_s28 = smov (!%p484_p2, %s483_s28), 2 }
  0x90   : > { %s4049_s16 = smov (!%p490_p6, %s489_s16), 2  ;;  %s2300_s22 = sshll.u32 %s4047_s28, 1 }
  0x91   : > { %s3396_s30 = scalar_lea.vmem %s3973_s6, %s2300_s22  ;;  %s2402_s24 = sshll.u32 %s4049_s16, 7 }
  0x92   : > { %s3401_s17 = scalar_lea.vmem %s3974_s7, %s2402_s24  ;;  %s4051_s23 = smov (!%p497_p10, %s496_s23), 2 }
  0x93   : > { %s499_s21 = scalar_lea.vmem %s3975_s8, %s4051_s23  ;;  %p2303_p7 = scmp.ge.s32.totalorder %s3196_s25, %s503_s29 }
  0x94   : > { %v2598_v0 = vld [vmem:[%s3386_s0 + $0x4] ss:$8 sps:$4 sm:$0xff] (!%p2303_p7)   ;;  %v2600_v1 = vld [vmem:[%s3386_s0] ss:$8 sps:$4 sm:$0xff] (!%p2303_p7)   ;;  %v3095_v2 = vmov (!%p2303_p7), 0   ;;  %v2624_v34 = vld [vmem:[%s3364_s18 + $0x10] sm:$0xff] (!%p2303_p7)  }
  0x95   : > { %507 = sbr.rel (%p2303_p7) target bundleno = 1473 (0x5c1), region = 64  ;;  %712 = vmatprep.mubr.bf16.mxu0 (!%p2303_p7), %v3095_v2  ;;  %680 = vmatprep.subr.bf16.mxu0 (!%p2303_p7), %v2598_v0  ;;  %v2601_v3 = vld [vmem:[%s3386_s0 + $0x14] ss:$8 sps:$4 sm:$0xff] (!%p2303_p7)   ;;  %v2603_v4 = vld [vmem:[%s3386_s0 + $0x10] ss:$8 sps:$4 sm:$0xff] (!%p2303_p7)   ;;  %v2622_v24 = vld [vmem:[%s3364_s18] sm:$0xff] (!%p2303_p7)  }
  0x96   : > { %681 = vmatpush1.bf16.msra.mxu0 (!%p2303_p7), %v2600_v1  ;;  %v2604_v5 = vld [vmem:[%s3386_s0 + $0x24] ss:$8 sps:$4 sm:$0xff] (!%p2303_p7)   ;;  %v2606_v6 = vld [vmem:[%s3386_s0 + $0x20] ss:$8 sps:$4 sm:$0xff] (!%p2303_p7)   ;;  %v2607_v7 = vld [vmem:[%s3386_s0 + $0x34] ss:$8 sps:$4 sm:$0xff] (!%p2303_p7)  }
  0x97   : > { %682 = vmatprep.subr.bf16.mxu0 (!%p2303_p7), %v2601_v3  ;;  %v2609_v8 = vld [vmem:[%s3386_s0 + $0x30] ss:$8 sps:$4 sm:$0xff] (!%p2303_p7)   ;;  %v2610_v9 = vld [vmem:[%s3386_s0 + $0x44] ss:$8 sps:$4 sm:$0xff] (!%p2303_p7)   ;;  %v2612_v10 = vld [vmem:[%s3386_s0 + $0x40] ss:$8 sps:$4 sm:$0xff] (!%p2303_p7)   ;;  %v542_v3 = vlaneseq (!%p2303_p7) }
  0x98   : > { %v2613_v11 = vld [vmem:[%s3386_s0 + $0x54] ss:$8 sps:$4 sm:$0xff] (!%p2303_p7)   ;;  %v2615_v12 = vld [vmem:[%s3386_s0 + $0x50] ss:$8 sps:$4 sm:$0xff] (!%p2303_p7)   ;;  %v2616_v13 = vld [vmem:[%s3386_s0 + $0x64] ss:$8 sps:$4 sm:$0xff] (!%p2303_p7)  }
  0x99   : > { %v2630_v14 = vld [vmem:[%s3371_s13 + $0x4] ss:$8 sps:$4 sm:$0xff] (!%p2303_p7)   ;;  %v2632_v15 = vld [vmem:[%s3371_s13] ss:$8 sps:$4 sm:$0xff] (!%p2303_p7)   ;;  %v2633_v16 = vld [vmem:[%s3371_s13 + $0x14] ss:$8 sps:$4 sm:$0xff] (!%p2303_p7)  }
  0x9a   : > { %683 = vmatpush1.bf16.msra.mxu0 (!%p2303_p7), %v2603_v4  ;;  %1173 = vmatprep.subr.bf16.mxu1 (!%p2303_p7), %v2630_v14  ;;  %v2635_v17 = vld [vmem:[%s3371_s13 + $0x10] ss:$8 sps:$4 sm:$0xff] (!%p2303_p7)   ;;  %v2618_v18 = vld [vmem:[%s3386_s0 + $0x60] ss:$8 sps:$4 sm:$0xff] (!%p2303_p7)   ;;  %v2636_v19 = vld [vmem:[%s3371_s13 + $0x24] ss:$8 sps:$4 sm:$0xff] (!%p2303_p7)  }
  0x9b   : > { %684 = vmatprep.subr.bf16.mxu0 (!%p2303_p7), %v2604_v5  ;;  %1174 = vmatpush1.bf16.msra.mxu1 (!%p2303_p7), %v2632_v15  ;;  %v2619_v20 = vld [vmem:[%s3386_s0 + $0x74] ss:$8 sps:$4 sm:$0xff] (!%p2303_p7)   ;;  %v2638_v21 = vld [vmem:[%s3371_s13 + $0x20] ss:$8 sps:$4 sm:$0xff] (!%p2303_p7)   ;;  %v2621_v22 = vld [vmem:[%s3386_s0 + $0x70] ss:$8 sps:$4 sm:$0xff] (!%p2303_p7)  }
  0x9c   : > { %1175 = vmatprep.subr.bf16.mxu1 %v2633_v16  ;;  %v2639_v23 = vld [vmem:[%s3371_s13 + $0x34] ss:$8 sps:$4 sm:$0xff]   ;;  %v2641_v25 = vld [vmem:[%s3371_s13 + $0x30] ss:$8 sps:$4 sm:$0xff]   ;;  %v2642_v26 = vld [vmem:[%s3371_s13 + $0x44] ss:$8 sps:$4 sm:$0xff]  }
  0x9d   : > { %v2644_v27 = vld [vmem:[%s3371_s13 + $0x40] ss:$8 sps:$4 sm:$0xff]   ;;  %v2645_v28 = vld [vmem:[%s3371_s13 + $0x54] ss:$8 sps:$4 sm:$0xff]   ;;  %v2647_v30 = vld [vmem:[%s3371_s13 + $0x50] ss:$8 sps:$4 sm:$0xff]  }
  0x9e   : > { %685 = vmatpush1.bf16.msra.mxu0 %v2606_v6  ;;  %v2623_v29 = vld [vmem:[%s3364_s18 + $0x8] sm:$0xff]   ;;  %v2651_v33 = vld [vmem:[%s3371_s13 + $0x74] ss:$8 sps:$4 sm:$0xff]   ;;  %v2653_v35 = vld [vmem:[%s3371_s13 + $0x70] ss:$8 sps:$4 sm:$0xff]   ;;  %v3486_v4 = vshrl.u32 %v542_v3, 7 }
  0x9f   : > { %686 = vmatprep.subr.bf16.mxu0 %v2607_v7  ;;  %1176 = vmatpush1.bf16.msra.mxu1 %v2635_v17  ;;  %v2648_v31 = vld [vmem:[%s3371_s13 + $0x64] ss:$8 sps:$4 sm:$0xff]   ;;  %v2650_v32 = vld [vmem:[%s3371_s13 + $0x60] ss:$8 sps:$4 sm:$0xff]   ;;  %v2657_v38 = vld [vmem:[%s3371_s13 + $0x94] ss:$8 sps:$4 sm:$0xff]  }
  0xa0   : > { %1177 = vmatprep.subr.bf16.mxu1 %v2636_v19  ;;  %v2654_v36 = vld [vmem:[%s3371_s13 + $0x84] ss:$8 sps:$4 sm:$0xff]   ;;  %v2656_v37 = vld [vmem:[%s3371_s13 + $0x80] ss:$8 sps:$4 sm:$0xff]   ;;  %v2625_v39 = vld [vmem:[%s3364_s18 + $0x18] sm:$0xff]   ;;  %v544_v5 = vsub.s32 0, %v3486_v4 }
  0xa1   : > { %v2659_v40 = vld [vmem:[%s3371_s13 + $0x90] ss:$8 sps:$4 sm:$0xff]   ;;  %v2626_v41 = vld [vmem:[%s3364_s18 + $0x20] sm:$0xff]   ;;  %v2627_v42 = vld [vmem:[%s3364_s18 + $0x28] sm:$0xff]   ;;  %v548_v7 = vsub.s32 1, %v3486_v4  ;;  %vm1694_vm0 = vcmask 31744  }
  0xa2   : > { %687 = vmatpush1.bf16.msra.mxu0 %v2609_v8  ;;  %v2628_v43 = vld [vmem:[%s3364_s18 + $0x30] sm:$0xff]   ;;  %v2629_v44 = vld [vmem:[%s3364_s18 + $0x38] sm:$0xff]   ;;  %v2660_v45 = vld [vmem:[%s3371_s13 + $0xa4] ss:$8 sps:$4 sm:$0xff]   ;;  %vm1920_vm1 = vcmask 1043456  }
  0xa3   : > { %688 = vmatprep.subr.bf16.mxu0 %v2610_v9  ;;  %1178 = vmatpush1.bf16.msra.mxu1 %v2638_v21  ;;  %v2662_v46 = vld [vmem:[%s3371_s13 + $0xa0] ss:$8 sps:$4 sm:$0xff]   ;;  %v2663_v47 = vld [vmem:[%s3371_s13 + $0xb4] ss:$8 sps:$4 sm:$0xff]   ;;  %v2665_v48 = vld [vmem:[%s3371_s13 + $0xb0] ss:$8 sps:$4 sm:$0xff]  }
  0xa4   : > { %1179 = vmatprep.subr.bf16.mxu1 %v2639_v23  ;;  %v2666_v49 = vld [vmem:[%s3371_s13 + $0xc4] ss:$8 sps:$4 sm:$0xff]   ;;  %v2668_v50 = vld [vmem:[%s3371_s13 + $0xc0] ss:$8 sps:$4 sm:$0xff]   ;;  %v2669_v51 = vld [vmem:[%s3371_s13 + $0xd4] ss:$8 sps:$4 sm:$0xff]  }
  0xa5   : > { %v2671_v52 = vld [vmem:[%s3371_s13 + $0xd0] ss:$8 sps:$4 sm:$0xff]   ;;  %v2672_v53 = vld [vmem:[%s3371_s13 + $0xe4] ss:$8 sps:$4 sm:$0xff]   ;;  %v2674_v54 = vld [vmem:[%s3371_s13 + $0xe0] ss:$8 sps:$4 sm:$0xff]  }
  0xa6   : > { %689 = vmatpush1.bf16.msra.mxu0 %v2612_v10  ;;  %v2675_v55 = vld [vmem:[%s3371_s13 + $0xf4] ss:$8 sps:$4 sm:$0xff]   ;;  %v2677_v56 = vld [vmem:[%s3371_s13 + $0xf0] ss:$8 sps:$4 sm:$0xff]   ;;  %v2678_v57 = vld [vmem:[%s3401_s17 + $0x40] sm:$0xff]  }
  0xa7   : > { %690 = vmatprep.subr.bf16.mxu0 %v2613_v11  ;;  %1180 = vmatpush1.bf16.msra.mxu1 %v2641_v25  ;;  %v2679_v58 = vld [vmem:[%s3401_s17] sm:$0xff]   ;;  %v2680_v59 = vld [vmem:[%s3401_s17 + $0x48] sm:$0xff]   ;;  %v2682_v61 = vld [vmem:[%s3401_s17 + $0x50] sm:$0xff]  }
  0xa8   : > { %1181 = vmatprep.subr.bf16.mxu1 %v2642_v26  ;;  %v2681_v60 = vld [vmem:[%s3401_s17 + $0x8] sm:$0xff]   ;;  %v2683_v62 = vld [vmem:[%s3401_s17 + $0x10] sm:$0xff]   ;;  %v2684_v63 = vld [vmem:[%s3401_s17 + $0x58] sm:$0xff]  }
  0xa9   : > { %v2685_v0 = vld [vmem:[%s3401_s17 + $0x18] sm:$0xff]   ;;  %v2686_v1 = vld [vmem:[%s3401_s17 + $0x60] sm:$0xff]  }
  0xaa   : > { %691 = vmatpush1.bf16.msra.mxu0 %v2615_v12  ;;  %v540_v6 = vld [vmem:[%s3391_s5] sm:$0x3] }
  0xab   : > { %692 = vmatprep.subr.bf16.mxu0 %v2616_v13  ;;  %1182 = vmatpush1.bf16.msra.mxu1 %v2644_v27  ;;  %v3493_v8 = vrot.slane %v540_v6, %v544_v5  ;;  %v3497_v9 = vrot.slane %v540_v6, %v548_v7 }
  0xac   : > { %1183 = vmatprep.subr.bf16.mxu1 %v2645_v28 }
  0xae   : > { %693 = vmatpush1.bf16.msra.mxu0 %v2618_v18 }
  0xaf   : > { %694 = vmatprep.subr.bf16.mxu0 %v2619_v20  ;;  %1184 = vmatpush1.bf16.msra.mxu1 %v2647_v30 }
  0xb0   : > { %1185 = vmatprep.subr.bf16.mxu1 %v2648_v31 }
  0xb2   : > { %695 = vmatpush1.bf16.msra.mxu0 %v2621_v22 }
  0xb3   : > { %1186 = vmatpush1.bf16.msra.mxu1 %v2650_v32  ;;  %2404 = vmatprep.subr.bf16.mxu0 %v2678_v57 }
  0xb4   : > { %1187 = vmatprep.subr.bf16.mxu1 %v2651_v33 }
  0xb5   : > { %713 = vmatmul.mubr.bf16.vlgmr.msra.gmra.mrb[0].mxu0 %v2622_v24 }
  0xb6   : > { %722 = vmatprep.mubr.bf16.mxu0 %v3095_v2  ;;  %2405 = vmatpush3.bf16.msra.mxu0 %v2679_v58 }
  0xb7   : > { %1188 = vmatpush1.bf16.msra.mxu1 %v2653_v35  ;;  %2406 = vmatprep.subr.bf16.mxu0 %v2680_v59 }
  0xb8   : > { %1189 = vmatprep.subr.bf16.mxu1 %v2654_v36 }
  0xba   : > { %2407 = vmatpush3.bf16.msra.mxu0 %v2681_v60 }
  0xbb   : > { %1190 = vmatpush1.bf16.msra.mxu1 %v2656_v37  ;;  %2408 = vmatprep.subr.bf16.mxu0 %v2682_v61 }
  0xbc   : > { %1191 = vmatprep.subr.bf16.mxu1 %v2657_v38 }
  0xbd   : > { %723 = vmatmul.mubr.bf16.gmra.mrb[4].mxu0 %v2623_v29 }
  0xbe   : > { %732 = vmatprep.mubr.bf16.mxu0 %v3095_v2  ;;  %2409 = vmatpush3.bf16.msra.mxu0 %v2683_v62 }
  0xbf   : > { %1192 = vmatpush1.bf16.msra.mxu1 %v2659_v40  ;;  %2410 = vmatprep.subr.bf16.mxu0 %v2684_v63 }
  0xc0   : > { %1193 = vmatprep.subr.bf16.mxu1 %v2660_v45 }
  0xc2   : > { %2411 = vmatpush3.bf16.msra.mxu0 %v2685_v0 }
  0xc3   : > { %1194 = vmatpush1.bf16.msra.mxu1 %v2662_v46  ;;  %2412 = vmatprep.subr.bf16.mxu0 %v2686_v1 }
  0xc4   : > { %1195 = vmatprep.subr.bf16.mxu1 %v2663_v47 }
  0xc5   : > { %733 = vmatmul.mubr.bf16.gmra.mrb[8].mxu0 %v2624_v34 }
  0xc6   : > { %742 = vmatprep.mubr.bf16.mxu0 %v3095_v2 }
  0xc7   : > { %1196 = vmatpush1.bf16.msra.mxu1 %v2665_v48 }
  0xc8   : > { %1197 = vmatprep.subr.bf16.mxu1 %v2666_v49 }
  0xcb   : > { %1198 = vmatpush1.bf16.msra.mxu1 %v2668_v50 }
  0xcc   : > { %1199 = vmatprep.subr.bf16.mxu1 %v2669_v51 }
  0xcd   : > { %743 = vmatmul.mubr.bf16.gmra.mrb[12].mxu0 %v2625_v39 }
  0xce   : > { %752 = vmatprep.mubr.bf16.mxu0 %v3095_v2 }
  0xcf   : > { %1200 = vmatpush1.bf16.msra.mxu1 %v2671_v52 }
  0xd0   : > { %1201 = vmatprep.subr.bf16.mxu1 %v2672_v53 }
  0xd3   : > { %1202 = vmatpush1.bf16.msra.mxu1 %v2674_v54 }
  0xd4   : > { %1203 = vmatprep.subr.bf16.mxu1 %v2675_v55 }
  0xd5   : > { %753 = vmatmul.mubr.bf16.gmra.mrb[16].mxu0 %v2626_v41 }
  0xd6   : > { %762 = vmatprep.mubr.bf16.mxu0 %v3095_v2 }
  0xd7   : > { %1204 = vmatpush1.bf16.msra.mxu1 %v2677_v56 }
  0xdd   : > { %763 = vmatmul.mubr.bf16.gmra.mrb[20].mxu0 %v2627_v42 }
  0xde   : > { %772 = vmatprep.mubr.bf16.mxu0 %v3095_v2 }
  0xe5   : > { %773 = vmatmul.mubr.bf16.gmra.mrb[24].mxu0 %v2628_v43 }
  0xe6   : > { %782 = vmatprep.mubr.bf16.mxu0 %v3095_v2  ;;  %v2687_v2 = vld [vmem:[%s3401_s17 + $0x20] sm:$0xff]  }
  0xe7   : > { %2413 = vmatpush3.bf16.msra.mxu0 %v2687_v2 }
  0xed   : > { %783 = vmatmul.mubr.bf16.gmra.mrb[28].mxu0 %v2629_v44 }
 0x188   : > { %v714_v10 = vpop.f32.mrb[0].mxu0 }
 0x189   : > { %v715_v11 = vadd.f32 %v714_v10, %v3493_v8  ;;  %v716_v12 = vpop.f32.mrb[1].mxu0 }
 0x18a   : > { %v717_v13 = vadd.f32 %v716_v12, %v3497_v9  ;;  %v718_v14 = vpop.f32.mrb[2].mxu0 }
 0x18b   : > { %v825_v15 = vmul.f32 0.70710677, %v715_v11  ;;  %v719_v16 = vadd.f32 %v718_v14, %v3493_v8  ;;  %v720_v17 = vpop.f32.mrb[3].mxu0  ;;  %v793_v38 = vmul.f32 0.5, %v715_v11 }
 0x18c   : > { %v826_v18 = vmul.f32 0.70710677, %v717_v13  ;;  %v721_v19 = vadd.f32 %v720_v17, %v3497_v9  ;;  %v794_v48 = vmul.f32 0.5, %v717_v13 }
 0x18d   : > { %2694 = verf.f32 %v825_v15  ;;  %v827_v20 = vmul.f32 0.70710677, %v719_v16  ;;  %v795_v43 = vmul.f32 0.5, %v719_v16 }
 0x18e   : > { %2696 = verf.f32 %v826_v18  ;;  %v828_v21 = vmul.f32 0.70710677, %v721_v19  ;;  %v796_v54 = vmul.f32 0.5, %v721_v19 }
 0x18f   : > { %2698 = verf.f32 %v827_v20 }
 0x190   : > { %2700 = verf.f32 %v828_v21  ;;  %v724_v22 = vpop.f32.mrb[4].mxu0 }
 0x191   : > { %v725_v23 = vadd.f32 %v724_v22, %v3493_v8  ;;  %v726_v24 = vpop.f32.mrb[5].mxu0 }
 0x192   : > { %v727_v25 = vadd.f32 %v726_v24, %v3497_v9  ;;  %v728_v26 = vpop.f32.mrb[6].mxu0 }
 0x193   : > { %v829_v27 = vmul.f32 0.70710677, %v725_v23  ;;  %v729_v28 = vadd.f32 %v728_v26, %v3493_v8  ;;  %v730_v29 = vpop.f32.mrb[7].mxu0  ;;  %v797_v14 = vmul.f32 0.5, %v725_v23 }
 0x194   : > { %v830_v30 = vmul.f32 0.70710677, %v727_v25  ;;  %v731_v31 = vadd.f32 %v730_v29, %v3497_v9  ;;  %v798_v19 = vmul.f32 0.5, %v727_v25 }
 0x195   : > { %2702 = verf.f32 %v829_v27  ;;  %v831_v32 = vmul.f32 0.70710677, %v729_v28  ;;  %v799_v15 = vmul.f32 0.5, %v729_v28 }
 0x196   : > { %2704 = verf.f32 %v830_v30  ;;  %v832_v33 = vmul.f32 0.70710677, %v731_v31  ;;  %v800_v20 = vmul.f32 0.5, %v731_v31 }
 0x197   : > { %v2695_v34 = vpop.eup %2694  ;;  %2706 = verf.f32 %v831_v32 }
 0x198   : > { %v2697_v35 = vpop.eup %2696  ;;  %2708 = verf.f32 %v832_v33  ;;  %v734_v36 = vpop.f32.mrb[8].mxu0  ;;  %v889_v39 = vadd.f32 1.0, %v2695_v34 }
 0x199   : > { %v2699_v37 = vpop.eup %2698  ;;  %v3508_v40 = vadd.f32 %v734_v36, %v3493_v8  ;;  %v736_v41 = vpop.f32.mrb[9].mxu0  ;;  %v890_v47 = vadd.f32 1.0, %v2697_v35 }
 0x19a   : > { %v2701_v42 = vpop.eup %2700  ;;  %v891_v44 = vadd.f32 1.0, %v2699_v37  ;;  %v3511_v45 = vadd.f32 %v736_v41, %v3497_v9  ;;  %v738_v46 = vpop.f32.mrb[10].mxu0  ;;  %v921_v57 = vmul.f32 %v889_v39, %v793_v38 }
 0x19b   : > { %v833_v49 = vmul.f32 0.70710677, %v3508_v40  ;;  %v3515_v50 = vadd.f32 %v738_v46, %v3493_v8  ;;  %v740_v51 = vpop.f32.mrb[11].mxu0  ;;  %v892_v52 = vadd.f32 1.0, %v2701_v42  ;;  %v922_v60 = vmul.f32 %v890_v47, %v794_v48 }
 0x19c   : > { %v923_v53 = vmul.f32 %v891_v44, %v795_v43  ;;  %v834_v55 = vmul.f32 0.70710677, %v3511_v45  ;;  %v3519_v56 = vadd.f32 %v740_v51, %v3497_v9  ;;  %v801_v46 = vmul.f32 0.5, %v3508_v40 }
 0x19d   : > { %2710 = verf.f32 %v833_v49  ;;  %v835_v58 = vmul.f32 0.70710677, %v3515_v50  ;;  %v924_v61 = vmul.f32 %v892_v52, %v796_v54  ;;  %v803_v47 = vmul.f32 0.5, %v3515_v50 }
 0x19e   : > { %2712 = verf.f32 %v834_v55  ;;  %v836_v59 = vmul.f32 0.70710677, %v3519_v56  ;;  %v953_v63 = vpack.c.bf16 %v923_v53, %v921_v57  ;;  %v802_v52 = vmul.f32 0.5, %v3511_v45 }
 0x19f   : > { %v2703_v62 = vpop.eup %2702  ;;  %2714 = verf.f32 %v835_v58  ;;  %v954_v3 = vpack.c.bf16 %v924_v61, %v922_v60  ;;  %v804_v53 = vmul.f32 0.5, %v3519_v56 }
 0x1a0   : > { %v2705_v0 = vpop.eup %2704  ;;  %v893_v1 = vadd.f32 1.0, %v2703_v62  ;;  %2716 = verf.f32 %v836_v59  ;;  %v744_v2 = vpop.f32.mrb[12].mxu0 }
 0x1a1   : > { %v2707_v6 = vpop.eup %2706  ;;  %v894_v10 = vadd.f32 1.0, %v2705_v0  ;;  %v3524_v11 = vadd.f32 %v744_v2, %v3493_v8  ;;  %v746_v12 = vpop.f32.mrb[13].mxu0  ;;  %1205 = vmatprep.mubr.bf16.mxu1 %v954_v3 }
 0x1a2   : > { %v2709_v13 = vpop.eup %2708  ;;  %v895_v16 = vadd.f32 1.0, %v2707_v6  ;;  %v3527_v17 = vadd.f32 %v746_v12, %v3497_v9  ;;  %v748_v18 = vpop.f32.mrb[14].mxu0  ;;  %1206 = vmatmul.mubr.bf16.vlgmr.msra.gmra.mrb[0].mxu1 %v953_v63  ;;  %v925_v26 = vmul.f32 %v893_v1, %v797_v14 }
 0x1a3   : > { %v896_v21 = vadd.f32 1.0, %v2709_v13  ;;  %v837_v22 = vmul.f32 0.70710677, %v3524_v11  ;;  %v750_v24 = vpop.f32.mrb[15].mxu0  ;;  %v749_v23 = vadd.f32 %v748_v18, %v3493_v8  ;;  %v926_v28 = vmul.f32 %v894_v10, %v798_v19 }
 0x1a4   : > { %v927_v27 = vmul.f32 %v895_v16, %v799_v15  ;;  %v838_v29 = vmul.f32 0.70710677, %v3527_v17  ;;  %v751_v32 = vadd.f32 %v750_v24, %v3497_v9  ;;  %v805_v14 = vmul.f32 0.5, %v3524_v11 }
 0x1a5   : > { %v928_v30 = vmul.f32 %v896_v21, %v800_v20  ;;  %2718 = verf.f32 %v837_v22  ;;  %v839_v33 = vmul.f32 0.70710677, %v749_v23  ;;  %v806_v20 = vmul.f32 0.5, %v3527_v17 }
 0x1a6   : > { %2720 = verf.f32 %v838_v29  ;;  %v955_v25 = vpack.c.bf16 %v927_v27, %v925_v26  ;;  %v840_v34 = vmul.f32 0.70710677, %v751_v32  ;;  %v807_v21 = vmul.f32 0.5, %v749_v23 }
 0x1a7   : > { %v2711_v31 = vpop.eup %2710  ;;  %v956_v35 = vpack.c.bf16 %v928_v30, %v926_v28  ;;  %2722 = verf.f32 %v839_v33  ;;  %v808_v27 = vmul.f32 0.5, %v751_v32 }
 0x1a8   : > { %v2713_v36 = vpop.eup %2712  ;;  %v897_v37 = vadd.f32 1.0, %v2711_v31  ;;  %v754_v38 = vpop.f32.mrb[16].mxu0  ;;  %2724 = verf.f32 %v840_v34 }
 0x1a9   : > { %v2715_v39 = vpop.eup %2714  ;;  %v898_v41 = vadd.f32 1.0, %v2713_v36  ;;  %v3534_v42 = vadd.f32 %v754_v38, %v3493_v8  ;;  %v756_v43 = vpop.f32.mrb[17].mxu0  ;;  %1215 = vmatprep.mubr.bf16.mxu1 %v956_v35 }
 0x1aa   : > { %v2717_v44 = vpop.eup %2716  ;;  %v899_v48 = vadd.f32 1.0, %v2715_v39  ;;  %v3539_v49 = vadd.f32 %v756_v43, %v3497_v9  ;;  %v758_v51 = vpop.f32.mrb[18].mxu0  ;;  %1216 = vmatmul.mubr.bf16.gmra.mrb[4].mxu1 %v955_v25  ;;  %v929_v58 = vmul.f32 %v897_v37, %v801_v46 }
 0x1ab   : > { %v900_v54 = vadd.f32 1.0, %v2717_v44  ;;  %v841_v55 = vmul.f32 0.70710677, %v3534_v42  ;;  %v760_v57 = vpop.f32.mrb[19].mxu0  ;;  %v759_v50 = vadd.f32 %v758_v51, %v3493_v8  ;;  %v930_v60 = vmul.f32 %v898_v41, %v802_v52 }
 0x1ac   : > { %v931_v59 = vmul.f32 %v899_v48, %v803_v47  ;;  %v842_v40 = vmul.f32 0.70710677, %v3539_v49  ;;  %v761_v62 = vadd.f32 %v760_v57, %v3497_v9  ;;  %v809_v46 = vmul.f32 0.5, %v3534_v42 }
 0x1ad   : > { %v932_v61 = vmul.f32 %v900_v54, %v804_v53  ;;  %2726 = verf.f32 %v841_v55  ;;  %v843_v45 = vmul.f32 0.70710677, %v759_v50  ;;  %v810_v53 = vmul.f32 0.5, %v3539_v49 }
 0x1ae   : > { %2728 = verf.f32 %v842_v40  ;;  %v957_v63 = vpack.c.bf16 %v931_v59, %v929_v58  ;;  %v844_v0 = vmul.f32 0.70710677, %v761_v62  ;;  %v811_v54 = vmul.f32 0.5, %v759_v50 }
 0x1af   : > { %v2719_v56 = vpop.eup %2718  ;;  %v958_v1 = vpack.c.bf16 %v932_v61, %v930_v60  ;;  %2730 = verf.f32 %v843_v45  ;;  %v812_v59 = vmul.f32 0.5, %v761_v62 }
 0x1b0   : > { %v2721_v2 = vpop.eup %2720  ;;  %v764_v3 = vpop.f32.mrb[20].mxu0  ;;  %v901_v6 = vadd.f32 1.0, %v2719_v56  ;;  %2732 = verf.f32 %v844_v0 }
 0x1b1   : > { %v3548_v10 = vadd.f32 %v764_v3, %v3493_v8  ;;  %v766_v12 = vpop.f32.mrb[21].mxu0  ;;  %1225 = vmatprep.mubr.bf16.mxu1 %v958_v1  ;;  %v2723_v13 = vpop.eup %2722  ;;  %v902_v15 = vadd.f32 1.0, %v2721_v2 }
 0x1b2   : > { %v3552_v16 = vadd.f32 %v766_v12, %v3497_v9  ;;  %v768_v18 = vpop.f32.mrb[22].mxu0  ;;  %v2725_v19 = vpop.eup %2724  ;;  %v903_v22 = vadd.f32 1.0, %v2723_v13  ;;  %1226 = vmatmul.mubr.bf16.gmra.mrb[8].mxu1 %v957_v63  ;;  %v933_v30 = vmul.f32 %v901_v6, %v805_v14 }
 0x1b3   : > { %v845_v24 = vmul.f32 0.70710677, %v3548_v10  ;;  %v770_v26 = vpop.f32.mrb[23].mxu0  ;;  %v904_v29 = vadd.f32 1.0, %v2725_v19  ;;  %v3558_v11 = vadd.f32 %v768_v18, %v3493_v8  ;;  %v934_v17 = vmul.f32 %v902_v15, %v806_v20 }
 0x1b4   : > { %v846_v28 = vmul.f32 0.70710677, %v3552_v16  ;;  %v935_v33 = vmul.f32 %v903_v22, %v807_v21  ;;  %v3561_v25 = vadd.f32 %v770_v26, %v3497_v9  ;;  %v813_v18 = vmul.f32 0.5, %v3548_v10 }
 0x1b5   : > { %2734 = verf.f32 %v845_v24  ;;  %v936_v23 = vmul.f32 %v904_v29, %v808_v27  ;;  %v847_v31 = vmul.f32 0.70710677, %v3558_v11  ;;  %v814_v24 = vmul.f32 0.5, %v3552_v16 }
 0x1b6   : > { %2736 = verf.f32 %v846_v28  ;;  %v848_v32 = vmul.f32 0.70710677, %v3561_v25  ;;  %v959_v35 = vpack.c.bf16 %v935_v33, %v933_v30  ;;  %v815_v26 = vmul.f32 0.5, %v3558_v11 }
 0x1b7   : > { %v2727_v34 = vpop.eup %2726  ;;  %2738 = verf.f32 %v847_v31  ;;  %v960_v38 = vpack.c.bf16 %v936_v23, %v934_v17  ;;  %v816_v30 = vmul.f32 0.5, %v3561_v25 }
 0x1b8   : > { %v2729_v36 = vpop.eup %2728  ;;  %v774_v37 = vpop.f32.mrb[24].mxu0  ;;  %v905_v39 = vadd.f32 1.0, %v2727_v34  ;;  %2740 = verf.f32 %v848_v32 }
 0x1b9   : > { %v3566_v41 = vadd.f32 %v774_v37, %v3493_v8  ;;  %v776_v43 = vpop.f32.mrb[25].mxu0  ;;  %v2731_v44 = vpop.eup %2730  ;;  %v906_v47 = vadd.f32 1.0, %v2729_v36  ;;  %1235 = vmatprep.mubr.bf16.mxu1 %v960_v38 }
 0x1ba   : > { %v3570_v48 = vadd.f32 %v776_v43, %v3497_v9  ;;  %v778_v51 = vpop.f32.mrb[26].mxu0  ;;  %v2733_v52 = vpop.eup %2732  ;;  %v907_v55 = vadd.f32 1.0, %v2731_v44  ;;  %1236 = vmatmul.mubr.bf16.gmra.mrb[12].mxu1 %v959_v35  ;;  %v937_v61 = vmul.f32 %v905_v39, %v809_v46 }
 0x1bb   : > { %v849_v57 = vmul.f32 0.70710677, %v3566_v41  ;;  %v780_v58 = vpop.f32.mrb[27].mxu0  ;;  %v908_v40 = vadd.f32 1.0, %v2733_v52  ;;  %v779_v42 = vadd.f32 %v778_v51, %v3493_v8  ;;  %v938_v56 = vmul.f32 %v906_v47, %v810_v53 }
 0x1bc   : > { %v850_v60 = vmul.f32 0.70710677, %v3570_v48  ;;  %v939_v45 = vmul.f32 %v907_v55, %v811_v54  ;;  %v781_v63 = vadd.f32 %v780_v58, %v3497_v9  ;;  %v817_v46 = vmul.f32 0.5, %v3566_v41 }
 0x1bd   : > { %2742 = verf.f32 %v849_v57  ;;  %v940_v0 = vmul.f32 %v908_v40, %v812_v59  ;;  %v851_v49 = vmul.f32 0.70710677, %v779_v42  ;;  %v819_v47 = vmul.f32 0.5, %v779_v42 }
 0x1be   : > { %2744 = verf.f32 %v850_v60  ;;  %v852_v1 = vmul.f32 0.70710677, %v781_v63  ;;  %v961_v2 = vpack.c.bf16 %v939_v45, %v937_v61  ;;  %v818_v51 = vmul.f32 0.5, %v3570_v48 }
 0x1bf   : > { %v2735_v50 = vpop.eup %2734  ;;  %2746 = verf.f32 %v851_v49  ;;  %v962_v6 = vpack.c.bf16 %v940_v0, %v938_v56  ;;  %v820_v52 = vmul.f32 0.5, %v781_v63 }
 0x1c0   : > { %v2737_v3 = vpop.eup %2736  ;;  %v784_v62 = vpop.f32.mrb[28].mxu0  ;;  %v909_v12 = vadd.f32 1.0, %v2735_v50  ;;  %2748 = verf.f32 %v852_v1 }
 0x1c1   : > { %v785_v13 = vadd.f32 %v784_v62, %v3493_v8  ;;  %v786_v14 = vpop.f32.mrb[29].mxu0  ;;  %v2739_v15 = vpop.eup %2738  ;;  %v910_v19 = vadd.f32 1.0, %v2737_v3  ;;  %1245 = vmatprep.mubr.bf16.mxu1 %v962_v6 }
 0x1c2   : > { %v787_v20 = vadd.f32 %v786_v14, %v3497_v9  ;;  %v788_v21 = vpop.f32.mrb[30].mxu0  ;;  %v2741_v22 = vpop.eup %2740  ;;  %v911_v27 = vadd.f32 1.0, %v2739_v15  ;;  %1246 = vmatmul.mubr.bf16.gmra.mrb[16].mxu1 %v961_v2  ;;  %v941_v23 = vmul.f32 %v909_v12, %v813_v18  ;;  %v2689_v15 = vld [vmem:[%s3401_s17 + $0x28] sm:$0xff]   ;;  %v2690_v18 = vld [vmem:[%s3401_s17 + $0x70] sm:$0xff]  }
 0x1c3   : > { %v853_v29 = vmul.f32 0.70710677, %v785_v13  ;;  %v790_v28 = vpop.f32.mrb[31].mxu0  ;;  %v912_v33 = vadd.f32 1.0, %v2741_v22  ;;  %v789_v10 = vadd.f32 %v788_v21, %v3493_v8  ;;  %v942_v32 = vmul.f32 %v910_v19, %v814_v24  ;;  %v2691_v19 = vld [vmem:[%s3401_s17 + $0x30] sm:$0xff]   ;;  %v2693_v21 = vld [vmem:[%s3401_s17 + $0x38] sm:$0xff]  }
 0x1c4   : > { %v854_v17 = vmul.f32 0.70710677, %v787_v20  ;;  %v943_v31 = vmul.f32 %v911_v27, %v815_v26  ;;  %v791_v34 = vadd.f32 %v790_v28, %v3497_v9  ;;  %v821_v42 = vmul.f32 0.5, %v785_v13  ;;  %v2688_v13 = vld [vmem:[%s3401_s17 + $0x68] sm:$0xff]   ;;  %v1001_v22 = vld [vmem:[%s3396_s30] sm:$0x3] }
 0x1c5   : > { %2750 = verf.f32 %v853_v29  ;;  %v944_v35 = vmul.f32 %v912_v33, %v816_v30  ;;  %v855_v16 = vmul.f32 0.70710677, %v789_v10  ;;  %v823_v49 = vmul.f32 0.5, %v789_v10  ;;  %2414 = vmatprep.subr.bf16.mxu0 %v2688_v13 }
 0x1c6   : > { %2752 = verf.f32 %v854_v17  ;;  %v856_v36 = vmul.f32 0.70710677, %v791_v34  ;;  %v963_v37 = vpack.c.bf16 %v943_v31, %v941_v23  ;;  %v822_v63 = vmul.f32 0.5, %v787_v20  ;;  %2415 = vmatpush3.bf16.msra.mxu0 %v2689_v15  ;;  %v2692_v20 = vld [vmem:[%s3401_s17 + $0x78] sm:$0xff]  }
 0x1c7   : > { %v2743_v11 = vpop.eup %2742  ;;  %2754 = verf.f32 %v855_v16  ;;  %v964_v39 = vpack.c.bf16 %v944_v35, %v942_v32  ;;  %v824_v50 = vmul.f32 0.5, %v791_v34  ;;  %2416 = vmatprep.subr.bf16.mxu0 %v2690_v18  ;;  %v3596_v24 = vrot.slane %v1001_v22, %v544_v5 }
 0x1c8   : > { %v2745_v38 = vpop.eup %2744  ;;  %v913_v25 = vadd.f32 1.0, %v2743_v11  ;;  %2756 = verf.f32 %v856_v36  ;;  %v3600_v26 = vrot.slane %v1001_v22, %v548_v7 }
 0x1c9   : > { %v2747_v43 = vpop.eup %2746  ;;  %v914_v44 = vadd.f32 1.0, %v2745_v38  ;;  %1255 = vmatprep.mubr.bf16.mxu1 %v964_v39 }
 0x1ca   : > { %v2749_v8 = vpop.eup %2748  ;;  %v915_v9 = vadd.f32 1.0, %v2747_v43  ;;  %1256 = vmatmul.mubr.bf16.gmra.mrb[20].mxu1 %v963_v37  ;;  %v945_v54 = vmul.f32 %v913_v25, %v817_v46  ;;  %2417 = vmatpush3.bf16.msra.mxu0 %v2691_v19 }
 0x1cb   : > { %v916_v53 = vadd.f32 1.0, %v2749_v8  ;;  %v946_v57 = vmul.f32 %v914_v44, %v818_v51  ;;  %2418 = vmatprep.subr.bf16.mxu0 %v2692_v20 }
 0x1cc   : > { %v947_v55 = vmul.f32 %v915_v9, %v819_v47 }
 0x1cd   : > { %v948_v58 = vmul.f32 %v916_v53, %v820_v52 }
 0x1ce   : > { %v965_v40 = vpack.c.bf16 %v947_v55, %v945_v54  ;;  %2419 = vmatpush3.bf16.msra.mxu0 %v2693_v21 }
 0x1cf   : > { %v2751_v59 = vpop.eup %2750  ;;  %v966_v61 = vpack.c.bf16 %v948_v58, %v946_v57 }
 0x1d0   : > { %v2753_v60 = vpop.eup %2752  ;;  %v917_v45 = vadd.f32 1.0, %v2751_v59 }
 0x1d1   : > { %v2755_v56 = vpop.eup %2754  ;;  %v918_v0 = vadd.f32 1.0, %v2753_v60  ;;  %1265 = vmatprep.mubr.bf16.mxu1 %v966_v61 }
 0x1d2   : > { %v2757_v41 = vpop.eup %2756  ;;  %v919_v48 = vadd.f32 1.0, %v2755_v56  ;;  %1266 = vmatmul.mubr.bf16.gmra.mrb[24].mxu1 %v965_v40  ;;  %v949_v2 = vmul.f32 %v917_v45, %v821_v42 }
 0x1d3   : > { %v920_v1 = vadd.f32 1.0, %v2757_v41  ;;  %v950_v62 = vmul.f32 %v918_v0, %v822_v63 }
 0x1d4   : > { %v951_v3 = vmul.f32 %v919_v48, %v823_v49 }
 0x1d5   : > { %v952_v6 = vmul.f32 %v920_v1, %v824_v50 }
 0x1d6   : > { %v967_v12 = vpack.c.bf16 %v951_v3, %v949_v2 }
 0x1d7   : > { %v968_v14 = vpack.c.bf16 %v952_v6, %v950_v62 }
 0x1d9   : > { %1275 = vmatprep.mubr.bf16.mxu1 %v968_v14 }
 0x1da   : > { %1276 = vmatmul.mubr.bf16.gmra.mrb[28].mxu1 %v967_v12 }
 0x275   : > { %v1207_v27 = vpop.f32.mrb[0].mxu1 }
 0x276   : > { %v1208_v29 = vadd.f32 %v1207_v27, %v3596_v24  ;;  %v1209_v28 = vpop.f32.mrb[1].mxu1 }
 0x277   : > { %v1210_v30 = vadd.f32 %v1209_v28, %v3600_v26  ;;  %v1211_v33 = vpop.f32.mrb[2].mxu1 }
 0x278   : > { %v1318_v17 = vmul.f32 0.70710677, %v1208_v29  ;;  %v1212_v10 = vadd.f32 %v1211_v33, %v3596_v24  ;;  %v1213_v23 = vpop.f32.mrb[3].mxu1  ;;  %v1286_v57 = vmul.f32 0.5, %v1208_v29 }
 0x279   : > { %v1319_v31 = vmul.f32 0.70710677, %v1210_v30  ;;  %v1214_v34 = vadd.f32 %v1213_v23, %v3600_v26  ;;  %v1287_v61 = vmul.f32 0.5, %v1210_v30 }
 0x27a   : > { %2758 = verf.f32 %v1318_v17  ;;  %v1320_v5 = vmul.f32 0.70710677, %v1212_v10  ;;  %v1288_v58 = vmul.f32 0.5, %v1212_v10 }
 0x27b   : > { %2760 = verf.f32 %v1319_v31  ;;  %v1321_v4 = vmul.f32 0.70710677, %v1214_v34  ;;  %v1289_v45 = vmul.f32 0.5, %v1214_v34 }
 0x27c   : > { %2762 = verf.f32 %v1320_v5 }
 0x27d   : > { %2764 = verf.f32 %v1321_v4  ;;  %v1217_v7 = vpop.f32.mrb[4].mxu1 }
 0x27e   : > { %v1218_v32 = vadd.f32 %v1217_v7, %v3596_v24  ;;  %v1219_v35 = vpop.f32.mrb[5].mxu1 }
 0x27f   : > { %v1220_v16 = vadd.f32 %v1219_v35, %v3600_v26  ;;  %v1221_v11 = vpop.f32.mrb[6].mxu1 }
 0x280   : > { %v1322_v36 = vmul.f32 0.70710677, %v1218_v32  ;;  %v1222_v37 = vadd.f32 %v1221_v11, %v3596_v24  ;;  %v1223_v38 = vpop.f32.mrb[7].mxu1  ;;  %v1290_v29 = vmul.f32 0.5, %v1218_v32 }
 0x281   : > { %v1323_v39 = vmul.f32 0.70710677, %v1220_v16  ;;  %v1224_v25 = vadd.f32 %v1223_v38, %v3600_v26  ;;  %v1291_v10 = vmul.f32 0.5, %v1220_v16 }
 0x282   : > { %2766 = verf.f32 %v1322_v36  ;;  %v1324_v43 = vmul.f32 0.70710677, %v1222_v37  ;;  %v1292_v28 = vmul.f32 0.5, %v1222_v37 }
 0x283   : > { %2768 = verf.f32 %v1323_v39  ;;  %v1325_v44 = vmul.f32 0.70710677, %v1224_v25  ;;  %v1293_v23 = vmul.f32 0.5, %v1224_v25 }
 0x284   : > { %v2759_v8 = vpop.eup %2758  ;;  %2770 = verf.f32 %v1324_v43 }
 0x285   : > { %v2761_v46 = vpop.eup %2760  ;;  %v1382_v47 = vadd.f32 1.0, %v2759_v8  ;;  %2772 = verf.f32 %v1325_v44  ;;  %v1227_v9 = vpop.f32.mrb[8].mxu1 }
 0x286   : > { %v2763_v51 = vpop.eup %2762  ;;  %v1383_v52 = vadd.f32 1.0, %v2761_v46  ;;  %v3611_v53 = vadd.f32 %v1227_v9, %v3596_v24  ;;  %v1229_v54 = vpop.f32.mrb[9].mxu1 }
 0x287   : > { %v2765_v55 = vpop.eup %2764  ;;  %v1384_v59 = vadd.f32 1.0, %v2763_v51  ;;  %v3614_v40 = vadd.f32 %v1229_v54, %v3600_v26  ;;  %v1231_v60 = vpop.f32.mrb[10].mxu1  ;;  %v1414_v42 = vmul.f32 %v1382_v47, %v1286_v57 }
 0x288   : > { %v1385_v56 = vadd.f32 1.0, %v2765_v55  ;;  %v1326_v0 = vmul.f32 0.70710677, %v3611_v53  ;;  %v1233_v41 = vpop.f32.mrb[11].mxu1  ;;  %v1232_v63 = vadd.f32 %v1231_v60, %v3596_v24  ;;  %v1415_v50 = vmul.f32 %v1383_v52, %v1287_v61 }
 0x289   : > { %v1416_v49 = vmul.f32 %v1384_v59, %v1288_v58  ;;  %v1327_v48 = vmul.f32 0.70710677, %v3614_v40  ;;  %v1234_v2 = vadd.f32 %v1233_v41, %v3600_v26  ;;  %v1294_v52 = vmul.f32 0.5, %v3611_v53 }
 0x28a   : > { %v1417_v1 = vmul.f32 %v1385_v56, %v1289_v45  ;;  %2774 = verf.f32 %v1326_v0  ;;  %v1328_v62 = vmul.f32 0.70710677, %v1232_v63  ;;  %v1295_v59 = vmul.f32 0.5, %v3614_v40 }
 0x28b   : > { %v1446_v3 = vpack.c.bf16 %v1416_v49, %v1414_v42  ;;  %2776 = verf.f32 %v1327_v48  ;;  %v1329_v12 = vmul.f32 0.70710677, %v1234_v2  ;;  %v1296_v60 = vmul.f32 0.5, %v1232_v63 }
 0x28c   : > { %v2767_v6 = vpop.eup %2766  ;;  %v1447_v14 = vpack.c.bf16 %v1417_v1, %v1415_v50  ;;  %2778 = verf.f32 %v1328_v62  ;;  %v1297_v0 = vmul.f32 0.5, %v1234_v2 }
 0x28d   : > { %v2769_v13 = vpop.eup %2768  ;;  %v1386_v15 = vadd.f32 1.0, %v2767_v6  ;;  %v1237_v18 = vpop.f32.mrb[12].mxu1  ;;  %2780 = verf.f32 %v1329_v12 }
 0x28e   : > { %v2771_v19 = vpop.eup %2770  ;;  %v1387_v20 = vadd.f32 1.0, %v2769_v13  ;;  %v3621_v21 = vadd.f32 %v1237_v18, %v3596_v24  ;;  %v1239_v22 = vpop.f32.mrb[13].mxu1  ;;  %1629 = vmatprep.mubr.bf16.mxu0 %v1447_v14 }
 0x28f   : > { %v2773_v27 = vpop.eup %2772  ;;  %v1388_v30 = vadd.f32 1.0, %v2771_v19  ;;  %v3624_v33 = vadd.f32 %v1239_v22, %v3600_v26  ;;  %v1241_v17 = vpop.f32.mrb[14].mxu1  ;;  %1630 = vmatmul.mubr.bf16.vlgmr.msra.gmra.mrb[32].mxu0 %v1446_v3  ;;  %v1418_v4 = vmul.f32 %v1386_v15, %v1290_v29 }
 0x290   : > { %v1389_v31 = vadd.f32 1.0, %v2773_v27  ;;  %v1330_v34 = vmul.f32 0.70710677, %v3621_v21  ;;  %v1243_v5 = vpop.f32.mrb[15].mxu1  ;;  %v1242_v11 = vadd.f32 %v1241_v17, %v3596_v24  ;;  %v1419_v32 = vmul.f32 %v1387_v20, %v1291_v10 }
 0x291   : > { %v1420_v7 = vmul.f32 %v1388_v30, %v1292_v28  ;;  %v1331_v35 = vmul.f32 0.70710677, %v3624_v33  ;;  %v1244_v37 = vadd.f32 %v1243_v5, %v3600_v26  ;;  %v1298_v20 = vmul.f32 0.5, %v3621_v21 }
 0x292   : > { %v1421_v36 = vmul.f32 %v1389_v31, %v1293_v23  ;;  %2782 = verf.f32 %v1330_v34  ;;  %v1332_v38 = vmul.f32 0.70710677, %v1242_v11  ;;  %v1299_v30 = vmul.f32 0.5, %v3624_v33 }
 0x293   : > { %2784 = verf.f32 %v1331_v35  ;;  %v1448_v39 = vpack.c.bf16 %v1420_v7, %v1418_v4  ;;  %v1333_v25 = vmul.f32 0.70710677, %v1244_v37  ;;  %v1300_v17 = vmul.f32 0.5, %v1242_v11 }
 0x294   : > { %v2775_v16 = vpop.eup %2774  ;;  %v1449_v43 = vpack.c.bf16 %v1421_v36, %v1419_v32  ;;  %2786 = verf.f32 %v1332_v38  ;;  %v1301_v34 = vmul.f32 0.5, %v1244_v37 }
 0x295   : > { %v2777_v44 = vpop.eup %2776  ;;  %v1247_v8 = vpop.f32.mrb[16].mxu1  ;;  %v1390_v46 = vadd.f32 1.0, %v2775_v16  ;;  %2788 = verf.f32 %v1333_v25 }
 0x296   : > { %v3631_v47 = vadd.f32 %v1247_v8, %v3596_v24  ;;  %v1249_v9 = vpop.f32.mrb[17].mxu1  ;;  %1637 = vmatprep.mubr.bf16.mxu0 %v1449_v43  ;;  %v2779_v51 = vpop.eup %2778  ;;  %v1391_v54 = vadd.f32 1.0, %v2777_v44 }
 0x297   : > { %v3635_v55 = vadd.f32 %v1249_v9, %v3600_v26  ;;  %v1251_v57 = vpop.f32.mrb[18].mxu1  ;;  %1638 = vmatmul.mubr.bf16.gmra.mrb[36].mxu0 %v1448_v39  ;;  %v2781_v58 = vpop.eup %2780  ;;  %v1392_v61 = vadd.f32 1.0, %v2779_v51  ;;  %v1422_v49 = vmul.f32 %v1390_v46, %v1294_v52 }
 0x298   : > { %v1334_v45 = vmul.f32 0.70710677, %v3631_v47  ;;  %v1253_v56 = vpop.f32.mrb[19].mxu1  ;;  %v1393_v41 = vadd.f32 1.0, %v2781_v58  ;;  %v3641_v53 = vadd.f32 %v1251_v57, %v3596_v24  ;;  %v1423_v1 = vmul.f32 %v1391_v54, %v1295_v59 }
 0x299   : > { %v1335_v42 = vmul.f32 0.70710677, %v3635_v55  ;;  %v1424_v48 = vmul.f32 %v1392_v61, %v1296_v60  ;;  %v3644_v50 = vadd.f32 %v1253_v56, %v3600_v26  ;;  %v1302_v51 = vmul.f32 0.5, %v3631_v47 }
 0x29a   : > { %2790 = verf.f32 %v1334_v45  ;;  %v1425_v40 = vmul.f32 %v1393_v41, %v1297_v0  ;;  %v1336_v63 = vmul.f32 0.70710677, %v3641_v53  ;;  %v1303_v59 = vmul.f32 0.5, %v3635_v55 }
 0x29b   : > { %2792 = verf.f32 %v1335_v42  ;;  %v1337_v2 = vmul.f32 0.70710677, %v3644_v50  ;;  %v1450_v62 = vpack.c.bf16 %v1424_v48, %v1422_v49  ;;  %v1304_v60 = vmul.f32 0.5, %v3641_v53 }
 0x29c   : > { %v2783_v3 = vpop.eup %2782  ;;  %2794 = verf.f32 %v1336_v63  ;;  %v1451_v14 = vpack.c.bf16 %v1425_v40, %v1423_v1  ;;  %v1305_v0 = vmul.f32 0.5, %v3644_v50 }
 0x29d   : > { %v2785_v6 = vpop.eup %2784  ;;  %v1257_v12 = vpop.f32.mrb[20].mxu1  ;;  %v1394_v13 = vadd.f32 1.0, %v2783_v3  ;;  %2796 = verf.f32 %v1337_v2 }
 0x29e   : > { %v3649_v15 = vadd.f32 %v1257_v12, %v3596_v24  ;;  %v1259_v18 = vpop.f32.mrb[21].mxu1  ;;  %v2787_v19 = vpop.eup %2786  ;;  %v1395_v22 = vadd.f32 1.0, %v2785_v6  ;;  %1645 = vmatprep.mubr.bf16.mxu0 %v1451_v14 }
 0x29f   : > { %v3653_v27 = vadd.f32 %v1259_v18, %v3600_v26  ;;  %v1261_v29 = vpop.f32.mrb[22].mxu1  ;;  %v2789_v28 = vpop.eup %2788  ;;  %v1396_v10 = vadd.f32 1.0, %v2787_v19  ;;  %1646 = vmatmul.mubr.bf16.gmra.mrb[40].mxu0 %v1450_v62  ;;  %v1426_v7 = vmul.f32 %v1394_v13, %v1298_v20 }
 0x2a0   : > { %v1338_v23 = vmul.f32 0.70710677, %v3649_v15  ;;  %v1263_v31 = vpop.f32.mrb[23].mxu1  ;;  %v1397_v5 = vadd.f32 1.0, %v2789_v28  ;;  %v3659_v21 = vadd.f32 %v1261_v29, %v3596_v24  ;;  %v1427_v33 = vmul.f32 %v1395_v22, %v1299_v30 }
 0x2a1   : > { %v1339_v4 = vmul.f32 0.70710677, %v3653_v27  ;;  %v1428_v35 = vmul.f32 %v1396_v10, %v1300_v17  ;;  %v3662_v32 = vadd.f32 %v1263_v31, %v3600_v26  ;;  %v1306_v19 = vmul.f32 0.5, %v3649_v15 }
 0x2a2   : > { %2798 = verf.f32 %v1338_v23  ;;  %v1429_v11 = vmul.f32 %v1397_v5, %v1301_v34  ;;  %v1340_v36 = vmul.f32 0.70710677, %v3659_v21  ;;  %v1307_v30 = vmul.f32 0.5, %v3653_v27 }
 0x2a3   : > { %2800 = verf.f32 %v1339_v4  ;;  %v1341_v37 = vmul.f32 0.70710677, %v3662_v32  ;;  %v1452_v39 = vpack.c.bf16 %v1428_v35, %v1426_v7  ;;  %v1308_v17 = vmul.f32 0.5, %v3659_v21 }
 0x2a4   : > { %v2791_v38 = vpop.eup %2790  ;;  %2802 = verf.f32 %v1340_v36  ;;  %v1453_v43 = vpack.c.bf16 %v1429_v11, %v1427_v33  ;;  %v1309_v34 = vmul.f32 0.5, %v3662_v32 }
 0x2a5   : > { %v2793_v16 = vpop.eup %2792  ;;  %v1267_v25 = vpop.f32.mrb[24].mxu1  ;;  %v1398_v44 = vadd.f32 1.0, %v2791_v38  ;;  %2804 = verf.f32 %v1341_v37 }
 0x2a6   : > { %v3667_v8 = vadd.f32 %v1267_v25, %v3596_v24  ;;  %v1269_v46 = vpop.f32.mrb[25].mxu1  ;;  %v2795_v9 = vpop.eup %2794  ;;  %v1399_v52 = vadd.f32 1.0, %v2793_v16  ;;  %1653 = vmatprep.mubr.bf16.mxu0 %v1453_v43 }
 0x2a7   : > { %v3671_v54 = vadd.f32 %v1269_v46, %v3600_v26  ;;  %v1271_v57 = vpop.f32.mrb[26].mxu1  ;;  %v2797_v58 = vpop.eup %2796  ;;  %v1400_v61 = vadd.f32 1.0, %v2795_v9  ;;  %1654 = vmatmul.mubr.bf16.gmra.mrb[44].mxu0 %v1452_v39  ;;  %v1430_v49 = vmul.f32 %v1398_v44, %v1302_v51 }
 0x2a8   : > { %v1342_v45 = vmul.f32 0.70710677, %v3667_v8  ;;  %v1273_v56 = vpop.f32.mrb[27].mxu1  ;;  %v1401_v41 = vadd.f32 1.0, %v2797_v58  ;;  %v1272_v42 = vadd.f32 %v1271_v57, %v3596_v24  ;;  %v1431_v55 = vmul.f32 %v1399_v52, %v1303_v59 }
 0x2a9   : > { %v1343_v47 = vmul.f32 0.70710677, %v3671_v54  ;;  %v1432_v48 = vmul.f32 %v1400_v61, %v1304_v60  ;;  %v1274_v1 = vadd.f32 %v1273_v56, %v3600_v26  ;;  %v1310_v44 = vmul.f32 0.5, %v3667_v8 }
 0x2aa   : > { %2806 = verf.f32 %v1342_v45  ;;  %v1433_v40 = vmul.f32 %v1401_v41, %v1305_v0  ;;  %v1344_v53 = vmul.f32 0.70710677, %v1272_v42  ;;  %v1312_v46 = vmul.f32 0.5, %v1272_v42 }
 0x2ab   : > { %2808 = verf.f32 %v1343_v47  ;;  %v1345_v3 = vmul.f32 0.70710677, %v1274_v1  ;;  %v1454_v2 = vpack.c.bf16 %v1432_v48, %v1430_v49  ;;  %v1311_v9 = vmul.f32 0.5, %v3671_v54 }
 0x2ac   : > { %v2799_v63 = vpop.eup %2798  ;;  %2810 = verf.f32 %v1344_v53  ;;  %v1455_v6 = vpack.c.bf16 %v1433_v40, %v1431_v55  ;;  %v1313_v51 = vmul.f32 0.5, %v1274_v1 }
 0x2ad   : > { %v2801_v62 = vpop.eup %2800  ;;  %v1277_v50 = vpop.f32.mrb[28].mxu1  ;;  %v1402_v12 = vadd.f32 1.0, %v2799_v63  ;;  %2812 = verf.f32 %v1345_v3 }
 0x2ae   : > { %v1278_v14 = vadd.f32 %v1277_v50, %v3596_v24  ;;  %v1279_v13 = vpop.f32.mrb[29].mxu1  ;;  %v2803_v18 = vpop.eup %2802  ;;  %v1403_v20 = vadd.f32 1.0, %v2801_v62  ;;  %1661 = vmatprep.mubr.bf16.mxu0 %v1455_v6 }
 0x2af   : > { %v1280_v22 = vadd.f32 %v1279_v13, %v3600_v26  ;;  %v1281_v29 = vpop.f32.mrb[30].mxu1  ;;  %v2805_v28 = vpop.eup %2804  ;;  %v1404_v10 = vadd.f32 1.0, %v2803_v18  ;;  %1662 = vmatmul.mubr.bf16.gmra.mrb[48].mxu0 %v1454_v2  ;;  %v1434_v7 = vmul.f32 %v1402_v12, %v1306_v19 }
 0x2b0   : > { %v1346_v23 = vmul.f32 0.70710677, %v1278_v14  ;;  %v1283_v31 = vpop.f32.mrb[31].mxu1  ;;  %v1405_v5 = vadd.f32 1.0, %v2805_v28  ;;  %v1282_v15 = vadd.f32 %v1281_v29, %v3596_v24  ;;  %v1435_v11 = vmul.f32 %v1403_v20, %v1307_v30 }
 0x2b1   : > { %v1347_v4 = vmul.f32 0.70710677, %v1280_v22  ;;  %v1436_v35 = vmul.f32 %v1404_v10, %v1308_v17  ;;  %v1284_v33 = vadd.f32 %v1283_v31, %v3600_v26  ;;  %v1314_v42 = vmul.f32 0.5, %v1278_v14  ;;  %v3695_v14 = vld [vmem:[%s499_s21] ss:$0 sm:$0xff] }
 0x2b2   : > { %2814 = verf.f32 %v1346_v23  ;;  %v1437_v36 = vmul.f32 %v1405_v5, %v1309_v34  ;;  %v1348_v27 = vmul.f32 0.70710677, %v1282_v15  ;;  %v1316_v48 = vmul.f32 0.5, %v1282_v15 }
 0x2b3   : > { %2816 = verf.f32 %v1347_v4  ;;  %v1349_v38 = vmul.f32 0.70710677, %v1284_v33  ;;  %v1456_v37 = vpack.c.bf16 %v1436_v35, %v1434_v7  ;;  %v1315_v54 = vmul.f32 0.5, %v1280_v22 }
 0x2b4   : > { %v2807_v21 = vpop.eup %2806  ;;  %2818 = verf.f32 %v1348_v27  ;;  %v1457_v16 = vpack.c.bf16 %v1437_v36, %v1435_v11  ;;  %v1317_v1 = vmul.f32 0.5, %v1284_v33 }
 0x2b5   : > { %v2809_v39 = vpop.eup %2808  ;;  %v1406_v32 = vadd.f32 1.0, %v2807_v21  ;;  %2820 = verf.f32 %v1349_v38 }
 0x2b6   : > { %v2811_v25 = vpop.eup %2810  ;;  %v1407_v43 = vadd.f32 1.0, %v2809_v39  ;;  %1669 = vmatprep.mubr.bf16.mxu0 %v1457_v16 }
 0x2b7   : > { %v2813_v24 = vpop.eup %2812  ;;  %v1408_v26 = vadd.f32 1.0, %v2811_v25  ;;  %1670 = vmatmul.mubr.bf16.gmra.mrb[52].mxu0 %v1456_v37  ;;  %v1438_v57 = vmul.f32 %v1406_v32, %v1310_v44 }
 0x2b8   : > { %v1409_v52 = vadd.f32 1.0, %v2813_v24  ;;  %v1439_v59 = vmul.f32 %v1407_v43, %v1311_v9 }
 0x2b9   : > { %v1440_v58 = vmul.f32 %v1408_v26, %v1312_v46 }
 0x2ba   : > { %v1441_v60 = vmul.f32 %v1409_v52, %v1313_v51 }
 0x2bb   : > { %v1458_v45 = vpack.c.bf16 %v1440_v58, %v1438_v57 }
 0x2bc   : > { %v2815_v61 = vpop.eup %2814  ;;  %v1459_v0 = vpack.c.bf16 %v1441_v60, %v1439_v59 }
 0x2bd   : > { %v2817_v56 = vpop.eup %2816  ;;  %v1410_v41 = vadd.f32 1.0, %v2815_v61 }
 0x2be   : > { %v2819_v47 = vpop.eup %2818  ;;  %v1411_v49 = vadd.f32 1.0, %v2817_v56  ;;  %1677 = vmatprep.mubr.bf16.mxu0 %v1459_v0 }
 0x2bf   : > { %v2821_v8 = vpop.eup %2820  ;;  %v1412_v55 = vadd.f32 1.0, %v2819_v47  ;;  %1678 = vmatmul.mubr.bf16.gmra.mrb[56].mxu0 %v1458_v45  ;;  %v1442_v53 = vmul.f32 %v1410_v41, %v1314_v42 }
 0x2c0   : > { %v1413_v40 = vadd.f32 1.0, %v2821_v8  ;;  %v1443_v3 = vmul.f32 %v1411_v49, %v1315_v54 }
 0x2c1   : > { %v1444_v63 = vmul.f32 %v1412_v55, %v1316_v48 }
 0x2c2   : > { %v1445_v2 = vmul.f32 %v1413_v40, %v1317_v1 }
 0x2c3   : > { %v1460_v62 = vpack.c.bf16 %v1444_v63, %v1442_v53 }
 0x2c4   : > { %v1461_v50 = vpack.c.bf16 %v1445_v2, %v1443_v3 }
 0x2c6   : > { %1685 = vmatprep.mubr.bf16.mxu0 %v1461_v50 }
 0x2c7   : > { %1686 = vmatmul.mubr.bf16.gmra.mrb[60].mxu0 %v1460_v62 }
 0x362   : > { %v2420_v6 = vpop.f32.mrb[32].mxu0 }
 0x363   : > { %v2421_v12 = vpop.f32.mrb[33].mxu0 }
 0x364   : > { %v2422_v13 = vadd.f32 %v2421_v12, %v2420_v6  ;;  %v2423_v18 = vpop.f32.mrb[34].mxu0 }
 0x365   : > { %v2424_v19 = vpop.f32.mrb[35].mxu0 }
 0x366   : > { %v2425_v20 = vadd.f32 %v2424_v19, %v2423_v18  ;;  %v3698_v22 = vadd.f32 %v2422_v13, %v3695_v14 }
 0x368   : > { %v1695_v29 = vsel %vm1694_vm0, %v3698_v22, -inf  ;;  %v3703_v28 = vadd.f32 %v2425_v20, %v3695_v14 }
 0x369   : > { %1696 = vmax.xlane.f32.xlu0 %v1695_v29 }
 0x36a   : > { %v2426_v30 = vpop.f32.mrb[36].mxu0  ;;  %v1698_v31 = vsel %vm1694_vm0, %v3703_v28, -inf }
 0x36b   : > { %v2427_v17 = vpop.f32.mrb[37].mxu0 }
 0x36c   : > { %v2428_v10 = vadd.f32 %v2427_v17, %v2426_v30  ;;  %v2429_v23 = vpop.f32.mrb[38].mxu0 }
 0x36d   : > { %v2430_v34 = vpop.f32.mrb[39].mxu0  ;;  %1699 = vmax.xlane.f32.xlu0 %v1698_v31 }
 0x36e   : > { %v2431_v5 = vadd.f32 %v2430_v34, %v2429_v23  ;;  %v3708_v4 = vadd.f32 %v2428_v10, %v3695_v14 }
 0x370   : > { %v1701_v15 = vsel %vm1694_vm0, %v3708_v4, -inf  ;;  %v3713_v7 = vadd.f32 %v2431_v5, %v3695_v14 }
 0x371   : > { %1702 = vmax.xlane.f32.xlu1 %v1701_v15 }
 0x372   : > { %v2432_v35 = vpop.f32.mrb[40].mxu0  ;;  %v1704_v11 = vsel %vm1694_vm0, %v3713_v7, -inf }
 0x373   : > { %v2433_v33 = vpop.f32.mrb[41].mxu0 }
 0x374   : > { %v2434_v36 = vadd.f32 %v2433_v33, %v2432_v35  ;;  %v2435_v27 = vpop.f32.mrb[42].mxu0 }
 0x375   : > { %1705 = vmax.xlane.f32.xlu1 %v1704_v11  ;;  %v2436_v21 = vpop.f32.mrb[43].mxu0  ;;  %v1871_v11 = vld [vmem:[%s3976_s9] sm:$0xf] }
 0x376   : > { %v2437_v38 = vadd.f32 %v2436_v21, %v2435_v27  ;;  %v3718_v37 = vadd.f32 %v2434_v36, %v3695_v14  ;;  %2485 = vmatprep.subr.msk.mxu1 %vm1920_vm1, %v1871_v11 }
 0x377   : > { %2486 = vmatpush3.msk.msra.mxu1 %vm1920_vm1, %v1871_v11 }
 0x378   : > { %v1707_v39 = vsel %vm1694_vm0, %v3718_v37, -inf  ;;  %v3723_v16 = vadd.f32 %v2437_v38, %v3695_v14 }
 0x379   : > { %1708 = vmax.xlane.f32.xlu0 %v1707_v39 }
 0x37a   : > { %v2438_v32 = vpop.f32.mrb[44].mxu0  ;;  %v1710_v25 = vsel %vm1694_vm0, %v3723_v16, -inf }
 0x37b   : > { %v2439_v43 = vpop.f32.mrb[45].mxu0  ;;  %1711 = vmax.xlane.f32.xlu1 %v1710_v25 }
 0x37c   : > { %v2440_v24 = vadd.f32 %v2439_v43, %v2438_v32  ;;  %v2441_v44 = vpop.f32.mrb[46].mxu0 }
 0x37d   : > { %v2442_v46 = vpop.f32.mrb[47].mxu0 }
 0x37e   : > { %v2443_v26 = vadd.f32 %v2442_v46, %v2441_v44  ;;  %v3728_v9 = vadd.f32 %v2440_v24, %v3695_v14 }
 0x380   : > { %v1713_v51 = vsel %vm1694_vm0, %v3728_v9, -inf  ;;  %v3733_v52 = vadd.f32 %v2443_v26, %v3695_v14 }
 0x381   : > { %1714 = vmax.xlane.f32.xlu0 %v1713_v51 }
 0x382   : > { %v2444_v57 = vpop.f32.mrb[48].mxu0  ;;  %v1716_v58 = vsel %vm1694_vm0, %v3733_v52, -inf }
 0x383   : > { %v2445_v59 = vpop.f32.mrb[49].mxu0  ;;  %1717 = vmax.xlane.f32.xlu1 %v1716_v58 }
 0x384   : > { %v2446_v60 = vadd.f32 %v2445_v59, %v2444_v57  ;;  %v2447_v61 = vpop.f32.mrb[50].mxu0 }
 0x385   : > { %v2448_v45 = vpop.f32.mrb[51].mxu0 }
 0x386   : > { %v2449_v56 = vadd.f32 %v2448_v45, %v2447_v61  ;;  %v3738_v0 = vadd.f32 %v2446_v60, %v3695_v14 }
 0x388   : > { %v1719_v41 = vsel %vm1694_vm0, %v3738_v0, -inf  ;;  %v3743_v47 = vadd.f32 %v2449_v56, %v3695_v14 }
 0x389   : > { %1720 = vmax.xlane.f32.xlu0 %v1719_v41 }
 0x38a   : > { %v2450_v49 = vpop.f32.mrb[52].mxu0  ;;  %v1722_v8 = vsel %vm1694_vm0, %v3743_v47, -inf }
 0x38b   : > { %v2451_v42 = vpop.f32.mrb[53].mxu0  ;;  %1723 = vmax.xlane.f32.xlu1 %v1722_v8 }
 0x38c   : > { %v2452_v48 = vadd.f32 %v2451_v42, %v2450_v49  ;;  %v2453_v55 = vpop.f32.mrb[54].mxu0 }
 0x38d   : > { %v2454_v54 = vpop.f32.mrb[55].mxu0 }
 0x38e   : > { %v2455_v1 = vadd.f32 %v2454_v54, %v2453_v55  ;;  %v3748_v40 = vadd.f32 %v2452_v48, %v3695_v14 }
 0x390   : > { %v1725_v53 = vsel %vm1694_vm0, %v3748_v40, -inf  ;;  %v3753_v63 = vadd.f32 %v2455_v1, %v3695_v14 }
 0x391   : > { %1726 = vmax.xlane.f32.xlu0 %v1725_v53 }
 0x392   : > { %v2456_v3 = vpop.f32.mrb[56].mxu0  ;;  %v1728_v2 = vsel %vm1694_vm0, %v3753_v63, -inf }
 0x393   : > { %v2457_v62 = vpop.f32.mrb[57].mxu0  ;;  %1729 = vmax.xlane.f32.xlu1 %v1728_v2 }
 0x394   : > { %v2458_v50 = vadd.f32 %v2457_v62, %v2456_v3  ;;  %v2459_v6 = vpop.f32.mrb[58].mxu0 }
 0x395   : > { %v2460_v12 = vpop.f32.mrb[59].mxu0 }
 0x396   : > { %v2461_v13 = vadd.f32 %v2460_v12, %v2459_v6  ;;  %v3758_v18 = vadd.f32 %v2458_v50, %v3695_v14 }
 0x398   : > { %v1731_v19 = vsel %vm1694_vm0, %v3758_v18, -inf  ;;  %v3763_v20 = vadd.f32 %v2461_v13, %v3695_v14 }
 0x399   : > { %1732 = vmax.xlane.f32.xlu0 %v1731_v19 }
 0x39a   : > { %v2462_v29 = vpop.f32.mrb[60].mxu0  ;;  %v1734_v30 = vsel %vm1694_vm0, %v3763_v20, -inf }
 0x39b   : > { %v2463_v17 = vpop.f32.mrb[61].mxu0  ;;  %1735 = vmax.xlane.f32.xlu1 %v1734_v30 }
 0x39c   : > { %v2464_v10 = vadd.f32 %v2463_v17, %v2462_v29  ;;  %v2465_v23 = vpop.f32.mrb[62].mxu0 }
 0x39d   : > { %v2466_v31 = vpop.f32.mrb[63].mxu0 }
 0x39e   : > { %v2467_v34 = vadd.f32 %v2466_v31, %v2465_v23  ;;  %v3768_v5 = vadd.f32 %v2464_v10, %v3695_v14 }
 0x3a0   : > { %v1737_v15 = vsel %vm1694_vm0, %v3768_v5, -inf  ;;  %v3773_v35 = vadd.f32 %v2467_v34, %v3695_v14 }
 0x3a1   : > { %1738 = vmax.xlane.f32.xlu0 %v1737_v15 }
 0x3a2   : > { %v1740_v33 = vsel %vm1694_vm0, %v3773_v35, -inf }
 0x3a3   : > { %1741 = vmax.xlane.f32.xlu1 %v1740_v33 }
 0x3f6   : > { %v1697_v36 = vpop.xlane.xlu0 %1696 }
 0x3f7   : > { %v1743_v27 = vsub.f32 %v3698_v22, %v1697_v36 }
 0x3f9   : > { %v1759_v21 = vmul.f32 1.442695, %v1743_v27 }
 0x3fa   : > { %v1700_v38 = vpop.xlane.xlu0 %1699 }
 0x3fb   : > { %2822 = vpow2.f32 %v1759_v21  ;;  %v1744_v14 = vsub.f32 %v3703_v28, %v1700_v38 }
 0x3fd   : > { %v1761_v39 = vmul.f32 1.442695, %v1744_v14 }
 0x3fe   : > { %v1703_v32 = vpop.xlane.xlu1 %1702 }
 0x3ff   : > { %2824 = vpow2.f32 %v1761_v39  ;;  %v1745_v25 = vsub.f32 %v3708_v4, %v1703_v32 }
 0x401   : > { %v1763_v43 = vmul.f32 1.442695, %v1745_v25 }
 0x402   : > { %v1706_v24 = vpop.xlane.xlu1 %1705 }
 0x403   : > { %2826 = vpow2.f32 %v1763_v43  ;;  %v1746_v44 = vsub.f32 %v3713_v7, %v1706_v24 }
 0x405   : > { %v3784_v46 = vpop.eup %2822  ;;  %v1765_v26 = vmul.f32 1.442695, %v1746_v44 }
 0x406   : > { %v1791_v22 = vsel %vm1694_vm0, %v3784_v46, 0.0  ;;  %v1709_v51 = vpop.xlane.xlu0 %1708 }
 0x407   : > { %2828 = vpow2.f32 %v1765_v26  ;;  %1792 = vadd.xlane.f32.xlu0 %v1791_v22  ;;  %v1747_v28 = vsub.f32 %v3718_v37, %v1709_v51 }
 0x408   : > { %v1712_v58 = vpop.xlane.xlu1 %1711 }
 0x409   : > { %v3789_v57 = vpop.eup %2824  ;;  %v1767_v4 = vmul.f32 1.442695, %v1747_v28  ;;  %v1748_v59 = vsub.f32 %v3723_v16, %v1712_v58 }
 0x40a   : > { %v1794_v7 = vsel %vm1694_vm0, %v3789_v57, 0.0 }
 0x40b   : > { %1795 = vadd.xlane.f32.xlu1 %v1794_v7  ;;  %2830 = vpow2.f32 %v1767_v4  ;;  %v1769_v60 = vmul.f32 1.442695, %v1748_v59 }
 0x40d   : > { %v3794_v61 = vpop.eup %2826  ;;  %2832 = vpow2.f32 %v1769_v60 }
 0x40e   : > { %v1797_v45 = vsel %vm1694_vm0, %v3794_v61, 0.0  ;;  %v1715_v56 = vpop.xlane.xlu0 %1714 }
 0x40f   : > { %1798 = vadd.xlane.f32.xlu0 %v1797_v45  ;;  %v1749_v37 = vsub.f32 %v3728_v9, %v1715_v56 }
 0x410   : > { %v1718_v49 = vpop.xlane.xlu1 %1717 }
 0x411   : > { %v3799_v41 = vpop.eup %2828  ;;  %v1771_v16 = vmul.f32 1.442695, %v1749_v37  ;;  %v1750_v8 = vsub.f32 %v3733_v52, %v1718_v49 }
 0x412   : > { %v1800_v42 = vsel %vm1694_vm0, %v3799_v41, 0.0 }
 0x413   : > { %1801 = vadd.xlane.f32.xlu1 %v1800_v42  ;;  %2834 = vpow2.f32 %v1771_v16  ;;  %v1773_v48 = vmul.f32 1.442695, %v1750_v8 }
 0x415   : > { %v3804_v55 = vpop.eup %2830  ;;  %2836 = vpow2.f32 %v1773_v48 }
 0x416   : > { %v1721_v54 = vpop.xlane.xlu0 %1720  ;;  %v1803_v1 = vsel %vm1694_vm0, %v3804_v55, 0.0 }
 0x417   : > { %v3808_v9 = vpop.eup %2832  ;;  %v1751_v53 = vsub.f32 %v3738_v0, %v1721_v54  ;;  %1804 = vadd.xlane.f32.xlu0 %v1803_v1 }
 0x418   : > { %v1724_v3 = vpop.xlane.xlu1 %1723  ;;  %v1806_v52 = vsel %vm1694_vm0, %v3808_v9, 0.0 }
 0x419   : > { %v1775_v2 = vmul.f32 1.442695, %v1751_v53  ;;  %v1752_v62 = vsub.f32 %v3743_v47, %v1724_v3  ;;  %1807 = vadd.xlane.f32.xlu1 %v1806_v52 }
 0x41b   : > { %2838 = vpow2.f32 %v1775_v2  ;;  %v1777_v50 = vmul.f32 1.442695, %v1752_v62 }
 0x41d   : > { %v3814_v6 = vpop.eup %2834  ;;  %2840 = vpow2.f32 %v1777_v50 }
 0x41e   : > { %v1727_v12 = vpop.xlane.xlu0 %1726  ;;  %v1809_v13 = vsel %vm1694_vm0, %v3814_v6, 0.0 }
 0x41f   : > { %v3818_v19 = vpop.eup %2836  ;;  %v1753_v0 = vsub.f32 %v3748_v40, %v1727_v12  ;;  %1810 = vadd.xlane.f32.xlu0 %v1809_v13 }
 0x420   : > { %v1730_v29 = vpop.xlane.xlu1 %1729  ;;  %v1812_v30 = vsel %vm1694_vm0, %v3818_v19, 0.0 }
 0x421   : > { %v1779_v47 = vmul.f32 1.442695, %v1753_v0  ;;  %v1754_v17 = vsub.f32 %v3753_v63, %v1730_v29  ;;  %1813 = vadd.xlane.f32.xlu1 %v1812_v30 }
 0x423   : > { %2842 = vpow2.f32 %v1779_v47  ;;  %v1781_v10 = vmul.f32 1.442695, %v1754_v17 }
 0x425   : > { %v3824_v23 = vpop.eup %2838  ;;  %2844 = vpow2.f32 %v1781_v10 }
 0x426   : > { %v1733_v31 = vpop.xlane.xlu0 %1732  ;;  %v1815_v34 = vsel %vm1694_vm0, %v3824_v23, 0.0 }
 0x427   : > { %v3828_v15 = vpop.eup %2840  ;;  %v1755_v40 = vsub.f32 %v3758_v18, %v1733_v31  ;;  %1816 = vadd.xlane.f32.xlu0 %v1815_v34 }
 0x428   : > { %v1736_v33 = vpop.xlane.xlu1 %1735  ;;  %v1818_v11 = vsel %vm1694_vm0, %v3828_v15, 0.0 }
 0x429   : > { %v1783_v63 = vmul.f32 1.442695, %v1755_v40  ;;  %v1756_v36 = vsub.f32 %v3763_v20, %v1736_v33  ;;  %1819 = vadd.xlane.f32.xlu1 %v1818_v11 }
 0x42b   : > { %2846 = vpow2.f32 %v1783_v63  ;;  %v1785_v27 = vmul.f32 1.442695, %v1756_v36 }
 0x42d   : > { %v3834_v21 = vpop.eup %2842  ;;  %2848 = vpow2.f32 %v1785_v27 }
 0x42e   : > { %v1739_v38 = vpop.xlane.xlu0 %1738  ;;  %v1821_v14 = vsel %vm1694_vm0, %v3834_v21, 0.0 }
 0x42f   : > { %v3838_v39 = vpop.eup %2844  ;;  %v1757_v18 = vsub.f32 %v3768_v5, %v1739_v38  ;;  %1822 = vadd.xlane.f32.xlu0 %v1821_v14 }
 0x430   : > { %v1742_v32 = vpop.xlane.xlu1 %1741  ;;  %v1824_v25 = vsel %vm1694_vm0, %v3838_v39, 0.0 }
 0x431   : > { %v1787_v20 = vmul.f32 1.442695, %v1757_v18  ;;  %v1758_v43 = vsub.f32 %v3773_v35, %v1742_v32  ;;  %1825 = vadd.xlane.f32.xlu1 %v1824_v25 }
 0x433   : > { %2850 = vpow2.f32 %v1787_v20  ;;  %v1789_v24 = vmul.f32 1.442695, %v1758_v43 }
 0x435   : > { %v3844_v44 = vpop.eup %2846  ;;  %2852 = vpow2.f32 %v1789_v24 }
 0x436   : > { %v1827_v26 = vsel %vm1694_vm0, %v3844_v44, 0.0 }
 0x437   : > { %v3848_v22 = vpop.eup %2848  ;;  %1828 = vadd.xlane.f32.xlu0 %v1827_v26 }
 0x438   : > { %v1830_v5 = vsel %vm1694_vm0, %v3848_v22, 0.0 }
 0x439   : > { %1831 = vadd.xlane.f32.xlu1 %v1830_v5 }
 0x43d   : > { %v3852_v51 = vpop.eup %2850 }
 0x43e   : > { %v1833_v35 = vsel %vm1694_vm0, %v3852_v51, 0.0 }
 0x43f   : > { %v3856_v28 = vpop.eup %2852  ;;  %1834 = vadd.xlane.f32.xlu0 %v1833_v35 }
 0x440   : > { %v1836_v58 = vsel %vm1694_vm0, %v3856_v28, 0.0 }
 0x441   : > { %1837 = vadd.xlane.f32.xlu1 %v1836_v58 }
 0x494   : > { %v1793_v4 = vpop.xlane.xlu0 %1792 }
 0x495   : > { %2854 = vrcp.f32 %v1793_v4 }
 0x498   : > { %v1796_v59 = vpop.xlane.xlu1 %1795 }
 0x499   : > { %2856 = vrcp.f32 %v1796_v59 }
 0x49c   : > { %v1799_v7 = vpop.xlane.xlu0 %1798 }
 0x49d   : > { %2858 = vrcp.f32 %v1799_v7 }
 0x49f   : > { %v2855_v60 = vpop.eup %2854 }
 0x4a0   : > { %v1802_v45 = vpop.xlane.xlu1 %1801  ;;  %v1855_v56 = vmul.f32 %v2855_v60, %v3784_v46 }
 0x4a1   : > { %2860 = vrcp.f32 %v1802_v45 }
 0x4a2   : > { %2487 = vmatprep.mubr.msk.f32.mxu1 %vm1694_vm0, %v1855_v56 }
 0x4a3   : > { %v2857_v37 = vpop.eup %2856 }
 0x4a4   : > { %v1856_v49 = vmul.f32 %v2857_v37, %v3789_v57  ;;  %v1805_v16 = vpop.xlane.xlu0 %1804 }
 0x4a5   : > { %2862 = vrcp.f32 %v1805_v16 }
 0x4a6   : > { %2488 = vmatmul.mubr.msk.f32.vlgmr.msra.gmra.mrb[32].mxu1 %vm1694_vm0, %v1856_v49  ;;  %v1808_v42 = vpop.xlane.xlu1 %1807 }
 0x4a7   : > { %v2859_v8 = vpop.eup %2858  ;;  %2864 = vrcp.f32 %v1808_v42 }
 0x4a8   : > { %v1857_v48 = vmul.f32 %v2859_v8, %v3794_v61 }
 0x4aa   : > { %2490 = vmatprep.mubr.msk.f32.mxu1 %vm1694_vm0, %v1857_v48 }
 0x4ab   : > { %v2861_v54 = vpop.eup %2860 }
 0x4ac   : > { %v1858_v46 = vmul.f32 %v2861_v54, %v3799_v41  ;;  %v1811_v1 = vpop.xlane.xlu0 %1810 }
 0x4ad   : > { %2866 = vrcp.f32 %v1811_v1 }
 0x4ae   : > { %2491 = vmatmul.mubr.msk.f32.gmra.mrb[34].mxu1 %vm1694_vm0, %v1858_v46  ;;  %v1814_v53 = vpop.xlane.xlu1 %1813 }
 0x4af   : > { %v2863_v57 = vpop.eup %2862  ;;  %2868 = vrcp.f32 %v1814_v53 }
 0x4b0   : > { %v1859_v3 = vmul.f32 %v2863_v57, %v3804_v55 }
 0x4b1   : > { %v2865_v52 = vpop.eup %2864 }
 0x4b2   : > { %2493 = vmatprep.mubr.msk.f32.mxu1 %vm1694_vm0, %v1859_v3  ;;  %v1860_v2 = vmul.f32 %v2865_v52, %v3808_v9 }
 0x4b4   : > { %2494 = vmatmul.mubr.msk.f32.gmra.mrb[36].mxu1 %vm1694_vm0, %v1860_v2  ;;  %v1817_v61 = vpop.xlane.xlu0 %1816 }
 0x4b5   : > { %2870 = vrcp.f32 %v1817_v61 }
 0x4b6   : > { %v1820_v62 = vpop.xlane.xlu1 %1819 }
 0x4b7   : > { %v2867_v41 = vpop.eup %2866  ;;  %2872 = vrcp.f32 %v1820_v62 }
 0x4b8   : > { %v1861_v50 = vmul.f32 %v2867_v41, %v3814_v6 }
 0x4b9   : > { %v2869_v12 = vpop.eup %2868 }
 0x4ba   : > { %2496 = vmatprep.mubr.msk.f32.mxu1 %vm1694_vm0, %v1861_v50  ;;  %v1862_v13 = vmul.f32 %v2869_v12, %v3818_v19 }
 0x4bc   : > { %2497 = vmatmul.mubr.msk.f32.gmra.mrb[38].mxu1 %vm1694_vm0, %v1862_v13  ;;  %v1823_v55 = vpop.xlane.xlu0 %1822 }
 0x4bd   : > { %2874 = vrcp.f32 %v1823_v55 }
 0x4be   : > { %v1826_v0 = vpop.xlane.xlu1 %1825 }
 0x4bf   : > { %v2871_v9 = vpop.eup %2870  ;;  %2876 = vrcp.f32 %v1826_v0 }
 0x4c0   : > { %v1863_v29 = vmul.f32 %v2871_v9, %v3824_v23 }
 0x4c1   : > { %v2873_v30 = vpop.eup %2872 }
 0x4c2   : > { %2499 = vmatprep.mubr.msk.f32.mxu1 %vm1694_vm0, %v1863_v29  ;;  %v1864_v47 = vmul.f32 %v2873_v30, %v3828_v15 }
 0x4c4   : > { %2500 = vmatmul.mubr.msk.f32.gmra.mrb[40].mxu1 %vm1694_vm0, %v1864_v47  ;;  %v1829_v6 = vpop.xlane.xlu0 %1828 }
 0x4c5   : > { %2878 = vrcp.f32 %v1829_v6 }
 0x4c6   : > { %v1832_v17 = vpop.xlane.xlu1 %1831 }
 0x4c7   : > { %v2875_v19 = vpop.eup %2874  ;;  %2880 = vrcp.f32 %v1832_v17 }
 0x4c8   : > { %v1865_v10 = vmul.f32 %v2875_v19, %v3834_v21 }
 0x4c9   : > { %v2877_v31 = vpop.eup %2876 }
 0x4ca   : > { %2502 = vmatprep.mubr.msk.f32.mxu1 %vm1694_vm0, %v1865_v10  ;;  %v1866_v34 = vmul.f32 %v2877_v31, %v3838_v39 }
 0x4cc   : > { %2503 = vmatmul.mubr.msk.f32.gmra.mrb[42].mxu1 %vm1694_vm0, %v1866_v34  ;;  %v1835_v23 = vpop.xlane.xlu0 %1834 }
 0x4cd   : > { %2882 = vrcp.f32 %v1835_v23 }
 0x4ce   : > { %v1838_v40 = vpop.xlane.xlu1 %1837 }
 0x4cf   : > { %v2879_v15 = vpop.eup %2878  ;;  %2884 = vrcp.f32 %v1838_v40 }
 0x4d0   : > { %v1867_v33 = vmul.f32 %v2879_v15, %v3844_v44 }
 0x4d1   : > { %v2881_v11 = vpop.eup %2880 }
 0x4d2   : > { %2505 = vmatprep.mubr.msk.f32.mxu1 %vm1694_vm0, %v1867_v33  ;;  %v1868_v63 = vmul.f32 %v2881_v11, %v3848_v22 }
 0x4d4   : > { %2506 = vmatmul.mubr.msk.f32.gmra.mrb[44].mxu1 %vm1694_vm0, %v1868_v63 }
 0x4d7   : > { %v2883_v36 = vpop.eup %2882 }
 0x4d8   : > { %v1869_v27 = vmul.f32 %v2883_v36, %v3852_v51 }
 0x4d9   : > { %v2885_v21 = vpop.eup %2884 }
 0x4da   : > { %2508 = vmatprep.mubr.msk.f32.mxu1 %vm1694_vm0, %v1869_v27  ;;  %v1870_v38 = vmul.f32 %v2885_v21, %v3856_v28 }
 0x4dc   : > { %2509 = vmatmul.mubr.msk.f32.gmra.mrb[46].mxu1 %vm1694_vm0, %v1870_v38 }
 0x579   : > { %v2489_v14 = vpop.f32.mrb[32].mxu1 }
 0x57a   : > { %v1996_v39 = vadd.f32 1e-10, %v2489_v14  ;;  %v1990_v18 = vpop.f32.mrb[33].mxu1 }
 0x57b   : > { %v1991_v32 = vadd.f32 1e-10, %v1990_v18 }
 0x57c   : > { %2886 = vlog2.f32 %v1996_v39 }
 0x57d   : > { %2888 = vlog2.f32 %v1991_v32 }
 0x581   : > { %v2492_v25 = vpop.f32.mrb[34].mxu1 }
 0x582   : > { %v2006_v20 = vadd.f32 1e-10, %v2492_v25  ;;  %v2000_v43 = vpop.f32.mrb[35].mxu1 }
 0x583   : > { %v2001_v24 = vadd.f32 1e-10, %v2000_v43 }
 0x584   : > { %2890 = vlog2.f32 %v2006_v20 }
 0x585   : > { %2892 = vlog2.f32 %v2001_v24 }
 0x586   : > { %v2887_v44 = vpop.eup %2886 }
 0x587   : > { %v2889_v26 = vpop.eup %2888  ;;  %v2072_v22 = vmul.f32 0.6931472, %v2887_v44  ;;  %v2495_v51 = vpop.f32.mrb[36].mxu1 }
 0x588   : > { %v2070_v5 = vmul.f32 0.6931472, %v2889_v26  ;;  %v2016_v35 = vadd.f32 1e-10, %v2495_v51  ;;  %v2010_v28 = vpop.f32.mrb[37].mxu1 }
 0x589   : > { %2102 = vst [vmem:[%s3409_s26 + $0x8] sm:$0xff] %v2072_v22  ;;  %v2011_v58 = vadd.f32 1e-10, %v2010_v28 }
 0x58a   : > { %2101 = vst [vmem:[%s3409_s26] sm:$0xff] %v2070_v5  ;;  %2894 = vlog2.f32 %v2016_v35 }
 0x58b   : > { %2896 = vlog2.f32 %v2011_v58 }
 0x58e   : > { %v2891_v4 = vpop.eup %2890 }
 0x58f   : > { %v2893_v59 = vpop.eup %2892  ;;  %v2076_v7 = vmul.f32 0.6931472, %v2891_v4  ;;  %v2498_v45 = vpop.f32.mrb[38].mxu1 }
 0x590   : > { %v2074_v60 = vmul.f32 0.6931472, %v2893_v59  ;;  %v2026_v56 = vadd.f32 1e-10, %v2498_v45  ;;  %v2020_v37 = vpop.f32.mrb[39].mxu1 }
 0x591   : > { %2104 = vst [vmem:[%s3409_s26 + $0x18] sm:$0xff] %v2076_v7  ;;  %v2021_v49 = vadd.f32 1e-10, %v2020_v37 }
 0x592   : > { %2103 = vst [vmem:[%s3409_s26 + $0x10] sm:$0xff] %v2074_v60  ;;  %2898 = vlog2.f32 %v2026_v56 }
 0x593   : > { %2900 = vlog2.f32 %v2021_v49 }
 0x594   : > { %v2895_v16 = vpop.eup %2894 }
 0x595   : > { %v2897_v8 = vpop.eup %2896  ;;  %v2080_v42 = vmul.f32 0.6931472, %v2895_v16 }
 0x596   : > { %v2078_v48 = vmul.f32 0.6931472, %v2897_v8 }
 0x597   : > { %2106 = vst [vmem:[%s3409_s26 + $0x28] sm:$0xff] %v2080_v42  ;;  %v2501_v54 = vpop.f32.mrb[40].mxu1 }
 0x598   : > { %2105 = vst [vmem:[%s3409_s26 + $0x20] sm:$0xff] %v2078_v48  ;;  %v2036_v46 = vadd.f32 1e-10, %v2501_v54  ;;  %v2030_v1 = vpop.f32.mrb[41].mxu1 }
 0x599   : > { %v2031_v53 = vadd.f32 1e-10, %v2030_v1 }
 0x59a   : > { %2902 = vlog2.f32 %v2036_v46 }
 0x59b   : > { %2904 = vlog2.f32 %v2031_v53 }
 0x59c   : > { %v2899_v57 = vpop.eup %2898 }
 0x59d   : > { %v2901_v3 = vpop.eup %2900  ;;  %v2084_v52 = vmul.f32 0.6931472, %v2899_v57 }
 0x59e   : > { %v2082_v2 = vmul.f32 0.6931472, %v2901_v3 }
 0x59f   : > { %2108 = vst [vmem:[%s3409_s26 + $0x38] sm:$0xff] %v2084_v52  ;;  %v2504_v61 = vpop.f32.mrb[42].mxu1 }
 0x5a0   : > { %2107 = vst [vmem:[%s3409_s26 + $0x30] sm:$0xff] %v2082_v2  ;;  %v2046_v62 = vadd.f32 1e-10, %v2504_v61  ;;  %v2040_v41 = vpop.f32.mrb[43].mxu1 }
 0x5a1   : > { %v2041_v50 = vadd.f32 1e-10, %v2040_v41 }
 0x5a2   : > { %2906 = vlog2.f32 %v2046_v62 }
 0x5a3   : > { %2908 = vlog2.f32 %v2041_v50 }
 0x5a4   : > { %v2903_v12 = vpop.eup %2902 }
 0x5a5   : > { %v2905_v13 = vpop.eup %2904  ;;  %v2088_v55 = vmul.f32 0.6931472, %v2903_v12 }
 0x5a6   : > { %v2086_v0 = vmul.f32 0.6931472, %v2905_v13 }
 0x5a7   : > { %2110 = vst [vmem:[%s3409_s26 + $0x48] sm:$0xff] %v2088_v55  ;;  %v2507_v9 = vpop.f32.mrb[44].mxu1 }
 0x5a8   : > { %2109 = vst [vmem:[%s3409_s26 + $0x40] sm:$0xff] %v2086_v0  ;;  %v2056_v29 = vadd.f32 1e-10, %v2507_v9  ;;  %v2050_v30 = vpop.f32.mrb[45].mxu1 }
 0x5a9   : > { %v2051_v47 = vadd.f32 1e-10, %v2050_v30 }
 0x5aa   : > { %2910 = vlog2.f32 %v2056_v29 }
 0x5ab   : > { %2912 = vlog2.f32 %v2051_v47 }
 0x5ac   : > { %v2907_v6 = vpop.eup %2906 }
 0x5ad   : > { %v2909_v17 = vpop.eup %2908  ;;  %v2092_v19 = vmul.f32 0.6931472, %v2907_v6 }
 0x5ae   : > { %v2090_v10 = vmul.f32 0.6931472, %v2909_v17 }
 0x5af   : > { %2112 = vst [vmem:[%s3409_s26 + $0x58] sm:$0xff] %v2092_v19  ;;  %v2510_v31 = vpop.f32.mrb[46].mxu1 }
 0x5b0   : > { %2111 = vst [vmem:[%s3409_s26 + $0x50] sm:$0xff] %v2090_v10  ;;  %v2066_v34 = vadd.f32 1e-10, %v2510_v31  ;;  %v2060_v23 = vpop.f32.mrb[47].mxu1 }
 0x5b1   : > { %v2061_v40 = vadd.f32 1e-10, %v2060_v23 }
 0x5b2   : > { %2914 = vlog2.f32 %v2066_v34 }
 0x5b3   : > { %2916 = vlog2.f32 %v2061_v40 }
 0x5b4   : > { %v2911_v15 = vpop.eup %2910 }
 0x5b5   : > { %v2913_v33 = vpop.eup %2912  ;;  %v2096_v11 = vmul.f32 0.6931472, %v2911_v15 }
 0x5b6   : > { %v2094_v63 = vmul.f32 0.6931472, %v2913_v33 }
 0x5b7   : > { %2114 = vst [vmem:[%s3409_s26 + $0x68] sm:$0xff] %v2096_v11 }
 0x5b8   : > { %2113 = vst [vmem:[%s3409_s26 + $0x60] sm:$0xff] %v2094_v63 }
 0x5bc   : > { %v2915_v36 = vpop.eup %2914 }
 0x5bd   : > { %v2917_v27 = vpop.eup %2916  ;;  %v2100_v21 = vmul.f32 0.6931472, %v2915_v36 }
 0x5be   : > { %v2098_v38 = vmul.f32 0.6931472, %v2917_v27 }
 0x5bf   : > { %2116 = vst [vmem:[%s3409_s26 + $0x78] sm:$0xff] %v2100_v21 }
 0x5c0   : > { %2115 = vst [vmem:[%s3409_s26 + $0x70] sm:$0xff] %v2098_v38 }
 0x5c1 PF: > { %s2403_s22 = sshll.u32 %s3196_s25, 11  ;;  %s4025_s13 = sld [smem:[#allocation29_spill]] }
 0x5c2   : > { %s2131_s28 = sshll.u32 %s3409_s26, 4  ;;  %s2118_s16 = scalar_lea.sflag [#allocation7], %s3360_s19  ;;  %s3915_s28 = int_to_ptr.vmem [resolvable:$true] %s2131_s28 }
 0x5c3   : > { %s2990_s29 = scalar_lea.vmem %s3915_s28, 2048  ;;  %p4026_p0 = scmp.ne.s32.totalorder %s4007_s14, 0 }
 0x5c4   : > { %p2991_p9 = scmp.ne.s32.totalorder %s3915_s28, %s2990_s29  ;;  %s3096_s23 = smov [#allocation10]  }
 0x5c5   : > { %s2994_s0 = sshll.u32 %s3096_s23, 4  ;;  %s2995_s0 = int_to_ptr.vmem [resolvable:$false] %s2994_s0 }
 0x5c6   : > { %p2992_p4 = pnand %p2991_p9, %p4026_p0  ;;  %s2996_s25 = scalar_lea.vmem %s2995_s0, 4096 }
 0x5c7   : > { %s3912_s12 = scalar_lea.hbm %s4025_s13, %s2403_s22  ;;  %p2997_p3 = scmp.lt.s32.totalorder %s3915_s28, %s2995_s0 }
 0x5c8   : > { %p2993_p5 = pneg %p2992_p4  ;;  %p2998_p8 = scmp.lt.s32.totalorder %s2996_s25, %s2990_s29 }
 0x5ca   : > { %p2999_p11 = por %p2998_p8, %p2997_p3 }
 0x5cc   : > { %p3000_p1 = pnand %p2999_p11, %p2993_p5 }
 0x5ce   : > { %3003 = shalt.err (!%p3000_p1)
}
 0x5cf   : > { %s3004_s11 = scalar_lea.hbm %s3912_s12, 2048  ;;  %s3008_s17 = scalar_lea.hbm %s4025_s13, 6144 }
 0x5d0   : > { %p3005_p12 = scmp.ne.s32.totalorder %s3912_s12, %s3004_s11  ;;  %p3009_p6 = scmp.lt.u32.totalorder %s3912_s12, %s4025_s13 }
 0x5d1   : > { %p3010_p10 = scmp.lt.u32.totalorder %s3008_s17, %s3004_s11  ;;  %p3012_p9 = scmp.lt.u32.totalorder %s3004_s11, %s3912_s12 }
 0x5d2   : > { %p3006_p13 = pnand %p3005_p12, %p4026_p0 }
 0x5d3   : > { %p3011_p7 = por %p3010_p10, %p3009_p6 }
 0x5d4   : > { %p3007_p2 = pneg %p3006_p13 }
 0x5d5   : > { %p3013_p4 = por %p3012_p9, %p3011_p7 }
 0x5d7   : > { %p3014_p5 = pnand %p3013_p4, %p3007_p2 }
 0x5d9   : > { %3017 = shalt.err (!%p3014_p5)
}
 0x5da   : > { %s3097_s21 = smov 128   ;;  %s3098_s26 = smov 8  }
 0x5db   : > { %2517 = dma.vmem_to_hbm [thread:$0]  (%p4026_p0), %s3915_s28, 2048, %s3912_s12, %s2118_s16, %s3097_s21, %s3097_s21, %s3098_s26  }
 0x5dc PF: > { %s4027_s5 = sld [smem:[#allocation22_spill]]  ;;  %s4028_s10 = sld [smem:[#allocation19_spill]] }
 0x5dd   : > { %s4029_s1 = sld [smem:[#allocation25_spill]] }
 0x5e2   : > { %p2533_p3 = scmp.ge.s32.totalorder %s4027_s5, 2  ;;  %s2146_s20 = sand.u32 1, %s4028_s10  }
 0x5e3   : > { %p4030_p8 = scmp.ne.s32.totalorder %s4029_s1, 0  ;;  %s2147_s22 = scalar_lea.sflag [#allocation7], %s2146_s20 }
 0x5e5   : > { %p2529_p11 = pnand %p2533_p3, %p4030_p8 }
 0x5e7   : > { %3057 = dma.done.wait (!%p2529_p11), %s2147_s22, 2048  }
 0x5e8   : > { %3059 = vsyncadd (!%p2529_p11), %s2147_s22, 4294965248  ;;  %s4031_s24 = sld [smem:[#allocation23_spill]]  ;;  %s4032_s0 = sld [smem:[#allocation17_spill]] }
 0x5e9   : > { %s4033_s1 = sld [smem:[#allocation18_spill]]  ;;  %s4034_s20 = sld [smem:[#allocation26_spill]] }
 0x5ea   : > { %s4035_s21 = sld [smem:[#allocation20_spill]]  ;;  %s4036_s22 = sld [smem:[#allocation21_spill]] }
 0x5eb   : > { %s4037_s23 = sld [smem:[#allocation24_spill]] }
 0x5ee   : > { %p33_p0 = scmp.ge.s32.totalorder %s4031_s24, 5  }
 0x5f0   :  { %35 = sbr.rel (!%p33_p0) target bundleno = 26 (0x1a), region = 129 }
 0x5f7   :  { %2152 = vsyncpa [#allocation6], 1 }
 0x5f8   :  { %2154 = vsyncpa [#allocation6 + $0x1], 1 }
 0x5f9   :  { %2155 = vsyncpa [#allocation9], 1 }
 0x5fa   :  { %2157 = vsyncpa [#allocation9 + $0x1], 1 }
 0x5fb   :  { %2158 = vsyncpa [#allocation7], 1 }
 0x5fc   :  { %2160 = vsyncpa [#allocation7 + $0x1], 1 }

</bundles_post_ra>
